<compile_context>
chip_gen: v6e
topology: v6e:2x2x1
jax: 0.10.0
libtpu: 0.0.40
codegen_flags: <defaults>
</compile_context>

<pallas_src>
import jax
import jax.numpy as jnp
from jax.experimental import pallas as pl
from jax.experimental.pallas import tpu as pltpu

KERNEL_SIZES = [3, 5, 7, 11, 15, 19, 23, 27]
COUT = 32
NUM_BANKS = len(KERNEL_SIZES)            # 8
KMAX = max(KERNEL_SIZES)                 # 27
PAD = KMAX // 2                          # 13
QPACK = 4                                # height taps packed per 128-lane group
DJ_PAD = 32                              # width taps (27) padded to 32 lanes
NGROUPS = -(-KMAX // QPACK)              # 7 groups -> covers di in [0, 28)
KTOT = NGROUPS * QPACK * DJ_PAD          # 896 contraction lanes (7 x 128)
CTOT = NUM_BANKS * COUT                  # 256 output lanes (lane-dense stores)
BIAS_LANE = DJ_PAD - 1                   # lane 31 of (g=0,q=0) is constant 1.0


def _fused_conv_kernel(xw_ref, w_ref, o_ref, p_ref):
    # xw_ref: (1, Hq, W, 128) bf16 — one image's q-packed width-im2col (revisited)
    # w_ref : (896, 256)      bf16 — all banks' weights, bias in row 31
    # o_ref : (TM, 256)       f32  — output tile, rows ordered (image_row, col)
    # p_ref : (TM, 896)       bf16 — scratch patch tile
    tm = o_ref.shape[0]
    w_cols = xw_ref.shape[2]
    tr = tm // w_cols                         # image rows per tile
    r0 = pl.program_id(1) * tr                # first image row of this tile
    # Assemble the patch: 7 groups of 4 height taps, each a sublane-offset row
    # slice of the packed input, stored at a 128-lane-aligned column offset.
    for g in range(NGROUPS):
        piece = xw_ref[0, pl.ds(r0 + QPACK * g, tr), :, :]      # (tr, W, 128)
        p_ref[:, 128 * g:128 * (g + 1)] = piece.reshape(tm, 128)
    acc = jnp.dot(p_ref[...], w_ref[...], preferred_element_type=jnp.float32)
    o_ref[...] = jnp.maximum(acc, 0.0)


def fuse_bank_params(params):
    """Pack the 8 (w, b) pairs into one (896, 256) bf16 weight matrix.

    Row index = di*32 + dj with di = 4*g + q (di in [0,28), dj in [0,32)).
    Bank with kernel size k is centered: its (a, b) weight lands at
    di = a + (27-k)//2, dj = b + (27-k)//2.  Row 31 (di=0, dj=31) carries the
    biases (matched by the constant-1.0 lane in the packed input).
    """
    cols, biases = [], []
    for (w, b) in params:
        k = w.shape[-1]
        off = (KMAX - k) // 2
        wf = jnp.zeros((COUT, NGROUPS * QPACK, DJ_PAD), jnp.float32)   # (32, 28, 32)
        wf = wf.at[:, off:off + k, off:off + k].set(
            w.reshape(COUT, k, k).astype(jnp.float32))
        cols.append(wf.reshape(COUT, KTOT).T)                          # (896, 32)
        biases.append(b.astype(jnp.float32))
    wmat = jnp.concatenate(cols, axis=1)                               # (896, 256)
    wmat = wmat.at[BIAS_LANE, :].set(jnp.concatenate(biases))          # fold bias
    return wmat.astype(jnp.bfloat16)


def _pack_input(x_nchw):
    """(N,1,H,W) f32 -> (N, H+24, W, 128) bf16 q-packed width-im2col.

    xw[n, hp, j, q*32 + dj] = xpad[n, hp + q, j + dj]  for dj < 27,
    lane 31 (q=0, dj=31) = 1.0 (bias column), other pad lanes = 0.
    """
    N, _, H, W = x_nchw.shape
    Hq = H + QPACK * (NGROUPS - 1)                                     # H + 24
    # 'same' pad for k=27 (13 each side) + 1 extra zero row at the bottom so
    # the di=27 lanes (zero weights) stay in bounds.
    xp = jnp.pad(x_nchw[:, 0].astype(jnp.float32),
                 ((0, 0), (PAD, PAD + 1), (PAD, PAD))).astype(jnp.bfloat16)
    lanes = []
    for q in range(QPACK):
        for dj in range(DJ_PAD):
            if dj < KMAX:
                lanes.append(xp[:, q:q + Hq, dj:dj + W])
            elif q == 0 and dj == BIAS_LANE:
                lanes.append(jnp.ones((N, Hq, W), jnp.bfloat16))
            else:
                lanes.append(jnp.zeros((N, Hq, W), jnp.bfloat16))
    return jnp.stack(lanes, axis=-1)                                   # (N, Hq, W, 128)


def _pick_tr(H, W, N):
    """Image rows per grid step: TM = TR*W in [~128, 1024], TR | H, and >= 4
    total grid steps so both v7x TensorCores get >= 2 pipelined steps each."""
    divs = [d for d in range(1, H + 1) if H % d == 0 and (d * W) % 8 == 0]
    if not divs:
        return H
    good = [d for d in divs if d * W <= 1024 and N * (H // d) >= 4]
    if good:
        return max(good)
    ok = [d for d in divs if d * W <= 1024]
    return max(ok) if ok else min(divs)


def model_forward(x_nchw, wmat):
    """Equivalent of Model.forward: returns (8*N, 32, H, W) float32."""
    N, Cin, H, W = x_nchw.shape
    assert Cin == 1
    xw = _pack_input(x_nchw)                    # (N, Hq, W, 128) bf16
    Hq = xw.shape[1]

    TR = _pick_tr(H, W, N)
    NR = H // TR
    TM = TR * W
    M = N * H * W
    assert TM % 8 == 0 or M == TM, "output tile rows must be sublane aligned"

    out = pl.pallas_call(
        _fused_conv_kernel,
        out_shape=jax.ShapeDtypeStruct((M, CTOT), jnp.float32),
        grid=(N, NR),
        in_specs=[
            # Whole packed image per n; index ignores r -> DMA'd once per image.
            pl.BlockSpec((1, Hq, W, 128), lambda n, r: (n, 0, 0, 0)),
            # Weights: constant block -> fetched once for the whole call.
            pl.BlockSpec((KTOT, CTOT), lambda n, r: (0, 0)),
        ],
        out_specs=pl.BlockSpec((TM, CTOT), lambda n, r: (n * NR + r, 0)),
        scratch_shapes=[pltpu.VMEM((TM, KTOT), jnp.bfloat16)],
        compiler_params=pltpu.CompilerParams(
            dimension_semantics=("parallel", "parallel")),
    )(xw, wmat)

    # One reshape/transpose for the concatenated result (required NCHW layout):
    # (M, 256) -> (N, H, W, bank, cout) -> (bank, N, cout, H, W) -> (8*N, 32, H, W)
    out = out.reshape(N, H, W, NUM_BANKS, COUT)
    out = out.transpose(3, 0, 4, 1, 2).reshape(NUM_BANKS * N, COUT, H, W)
    return out


def init_params(key):
    """Deterministic synthetic init (PyTorch-Conv2d-style uniform bounds)."""
    params = []
    for k in KERNEL_SIZES:
        key, kw, kb = jax.random.split(key, 3)
        bound = 1.0 / float(k * k) ** 0.5      # fan_in = Cin * k * k, Cin = 1
        w = jax.random.uniform(kw, (COUT, 1, k, k), jnp.float32, -bound, bound)
        b = jax.random.uniform(kb, (COUT,), jnp.float32, -bound, bound)
        params.append((w, b))
    return params


def _reference_forward(x, params):
    # Plain-JAX f32 reference (correctness spot-check only).
    outs = []
    for (w, b) in params:
        k = w.shape[-1]
        y = jax.lax.conv_general_dilated(
            x, w, window_strides=(1, 1), padding=[(k // 2, k // 2)] * 2,
            dimension_numbers=("NCHW", "OIHW", "NCHW"))
        outs.append(jnp.maximum(y + b[None, :, None, None], 0.0))
    return jnp.concatenate(outs, axis=0)


if __name__ == "__main__":
    key = jax.random.PRNGKey(0)
    key, kx = jax.random.split(key)
    x = jax.random.normal(kx, (2, 1, 16, 16), jnp.float32)   # N=2, Cin=1, H=W=16

    params = init_params(jax.random.PRNGKey(42))
    wmat = fuse_bank_params(params)                          # packed once, reused

    fwd = jax.jit(model_forward)
    out = jax.block_until_ready(fwd(x, wmat))
    assert out.shape == (NUM_BANKS * 2, COUT, 16, 16), out.shape

    ref = jax.block_until_ready(_reference_forward(x, params))
    # bf16 MXU inputs -> looser tolerance than the f32 reference.
    max_err = float(jnp.max(jnp.abs(out - ref)))
    assert jnp.allclose(out, ref, atol=3e-2, rtol=3e-2), f"mismatch, max err {max_err}"

    print("KERNEL_OK")
</pallas_src>

<mosaic_0001>
module attributes {stable_mosaic.version = 11 : i64} {
  func.func @_fused_conv_kernel(%arg0: i32, %arg1: i32, %arg2: memref<1x40x16x128xbf16, #tpu.memory_space<vmem>>, %arg3: memref<896x256xbf16, #tpu.memory_space<vmem>>, %arg4: memref<128x256xf32, #tpu.memory_space<vmem>>, %arg5: memref<128x896xbf16, #tpu.memory_space<vmem>>) attributes {dimension_semantics = [#tpu.dimension_semantics<parallel>, #tpu.dimension_semantics<parallel>], iteration_bounds = array<i64: 2, 2>, scalar_prefetch = 0 : i64, scratch_operands = 1 : i64, tpu.core_type = #tpu.core_type<tc>, window_params = [{transform_indices = @transform_0, window_bounds = array<i64: 1, 40, 16, 128>}, {pipeline_mode = #tpu.pipeline_mode<synchronous>, transform_indices = @transform_1, window_bounds = array<i64: 896, 256>}, {transform_indices = @transform_2, window_bounds = array<i64: 128, 256>}]} {
    %c8_i32 = arith.constant 8 : i32
    %0 = arith.muli %arg1, %c8_i32 : i32
    %c0_i32 = arith.constant 0 : i32
    %1 = arith.addi %0, %c0_i32 : i32
    %c0 = arith.constant 0 : index
    %2 = arith.index_cast %1 : i32 to index
    %c0_0 = arith.constant 0 : index
    %c0_1 = arith.constant 0 : index
    %3 = vector.load %arg2[%c0, %2, %c0_0, %c0_1] : memref<1x40x16x128xbf16, #tpu.memory_space<vmem>>, vector<1x8x16x128xbf16>
    %4 = vector.shape_cast %3 : vector<1x8x16x128xbf16> to vector<8x16x128xbf16>
    %5 = vector.shape_cast %4 : vector<8x16x128xbf16> to vector<128x128xbf16>
    %c0_2 = arith.constant 0 : index
    %c0_3 = arith.constant 0 : index
    %6 = vector.load %arg5[%c0_2, %c0_3] : memref<128x896xbf16, #tpu.memory_space<vmem>>, vector<128x128xbf16>
    tpu.vector_store %arg5[%c0_2, %c0_3], %5 {strides = array<i32>} : memref<128x896xbf16, #tpu.memory_space<vmem>>, vector<128x128xbf16>,
    %c4_i32 = arith.constant 4 : i32
    %7 = arith.addi %0, %c4_i32 : i32
    %c0_4 = arith.constant 0 : index
    %8 = arith.index_cast %7 : i32 to index
    %c0_5 = arith.constant 0 : index
    %c0_6 = arith.constant 0 : index
    %9 = vector.load %arg2[%c0_4, %8, %c0_5, %c0_6] : memref<1x40x16x128xbf16, #tpu.memory_space<vmem>>, vector<1x8x16x128xbf16>
    %10 = vector.shape_cast %9 : vector<1x8x16x128xbf16> to vector<8x16x128xbf16>
    %11 = vector.shape_cast %10 : vector<8x16x128xbf16> to vector<128x128xbf16>
    %c0_7 = arith.constant 0 : index
    %c128 = arith.constant 128 : index
    %12 = vector.load %arg5[%c0_7, %c128] : memref<128x896xbf16, #tpu.memory_space<vmem>>, vector<128x128xbf16>
    tpu.vector_store %arg5[%c0_7, %c128], %11 {strides = array<i32>} : memref<128x896xbf16, #tpu.memory_space<vmem>>, vector<128x128xbf16>,
    %c8_i32_8 = arith.constant 8 : i32
    %13 = arith.addi %0, %c8_i32_8 : i32
    %c0_9 = arith.constant 0 : index
    %14 = arith.index_cast %13 : i32 to index
    %c0_10 = arith.constant 0 : index
    %c0_11 = arith.constant 0 : index
    %15 = vector.load %arg2[%c0_9, %14, %c0_10, %c0_11] : memref<1x40x16x128xbf16, #tpu.memory_space<vmem>>, vector<1x8x16x128xbf16>
    %16 = vector.shape_cast %15 : vector<1x8x16x128xbf16> to vector<8x16x128xbf16>
    %17 = vector.shape_cast %16 : vector<8x16x128xbf16> to vector<128x128xbf16>
    %c0_12 = arith.constant 0 : index
    %c256 = arith.constant 256 : index
    %18 = vector.load %arg5[%c0_12, %c256] : memref<128x896xbf16, #tpu.memory_space<vmem>>, vector<128x128xbf16>
    tpu.vector_store %arg5[%c0_12, %c256], %17 {strides = array<i32>} : memref<128x896xbf16, #tpu.memory_space<vmem>>, vector<128x128xbf16>,
    %c12_i32 = arith.constant 12 : i32
    %19 = arith.addi %0, %c12_i32 : i32
    %c0_13 = arith.constant 0 : index
    %20 = arith.index_cast %19 : i32 to index
    %c0_14 = arith.constant 0 : index
    %c0_15 = arith.constant 0 : index
    %21 = vector.load %arg2[%c0_13, %20, %c0_14, %c0_15] : memref<1x40x16x128xbf16, #tpu.memory_space<vmem>>, vector<1x8x16x128xbf16>
    %22 = vector.shape_cast %21 : vector<1x8x16x128xbf16> to vector<8x16x128xbf16>
    %23 = vector.shape_cast %22 : vector<8x16x128xbf16> to vector<128x128xbf16>
    %c0_16 = arith.constant 0 : index
    %c384 = arith.constant 384 : index
    %24 = vector.load %arg5[%c0_16, %c384] : memref<128x896xbf16, #tpu.memory_space<vmem>>, vector<128x128xbf16>
    tpu.vector_store %arg5[%c0_16, %c384], %23 {strides = array<i32>} : memref<128x896xbf16, #tpu.memory_space<vmem>>, vector<128x128xbf16>,
    %c16_i32 = arith.constant 16 : i32
    %25 = arith.addi %0, %c16_i32 : i32
    %c0_17 = arith.constant 0 : index
    %26 = arith.index_cast %25 : i32 to index
    %c0_18 = arith.constant 0 : index
    %c0_19 = arith.constant 0 : index
    %27 = vector.load %arg2[%c0_17, %26, %c0_18, %c0_19] : memref<1x40x16x128xbf16, #tpu.memory_space<vmem>>, vector<1x8x16x128xbf16>
    %28 = vector.shape_cast %27 : vector<1x8x16x128xbf16> to vector<8x16x128xbf16>
    %29 = vector.shape_cast %28 : vector<8x16x128xbf16> to vector<128x128xbf16>
    %c0_20 = arith.constant 0 : index
    %c512 = arith.constant 512 : index
    %30 = vector.load %arg5[%c0_20, %c512] : memref<128x896xbf16, #tpu.memory_space<vmem>>, vector<128x128xbf16>
    tpu.vector_store %arg5[%c0_20, %c512], %29 {strides = array<i32>} : memref<128x896xbf16, #tpu.memory_space<vmem>>, vector<128x128xbf16>,
    %c20_i32 = arith.constant 20 : i32
    %31 = arith.addi %0, %c20_i32 : i32
    %c0_21 = arith.constant 0 : index
    %32 = arith.index_cast %31 : i32 to index
    %c0_22 = arith.constant 0 : index
    %c0_23 = arith.constant 0 : index
    %33 = vector.load %arg2[%c0_21, %32, %c0_22, %c0_23] : memref<1x40x16x128xbf16, #tpu.memory_space<vmem>>, vector<1x8x16x128xbf16>
    %34 = vector.shape_cast %33 : vector<1x8x16x128xbf16> to vector<8x16x128xbf16>
    %35 = vector.shape_cast %34 : vector<8x16x128xbf16> to vector<128x128xbf16>
    %c0_24 = arith.constant 0 : index
    %c640 = arith.constant 640 : index
    %36 = vector.load %arg5[%c0_24, %c640] : memref<128x896xbf16, #tpu.memory_space<vmem>>, vector<128x128xbf16>
    tpu.vector_store %arg5[%c0_24, %c640], %35 {strides = array<i32>} : memref<128x896xbf16, #tpu.memory_space<vmem>>, vector<128x128xbf16>,
    %c24_i32 = arith.constant 24 : i32
    %37 = arith.addi %0, %c24_i32 : i32
    %c0_25 = arith.constant 0 : index
    %38 = arith.index_cast %37 : i32 to index
    %c0_26 = arith.constant 0 : index
    %c0_27 = arith.constant 0 : index
    %39 = vector.load %arg2[%c0_25, %38, %c0_26, %c0_27] : memref<1x40x16x128xbf16, #tpu.memory_space<vmem>>, vector<1x8x16x128xbf16>
    %40 = vector.shape_cast %39 : vector<1x8x16x128xbf16> to vector<8x16x128xbf16>
    %41 = vector.shape_cast %40 : vector<8x16x128xbf16> to vector<128x128xbf16>
    %c0_28 = arith.constant 0 : index
    %c768 = arith.constant 768 : index
    %42 = vector.load %arg5[%c0_28, %c768] : memref<128x896xbf16, #tpu.memory_space<vmem>>, vector<128x128xbf16>
    tpu.vector_store %arg5[%c0_28, %c768], %41 {strides = array<i32>} : memref<128x896xbf16, #tpu.memory_space<vmem>>, vector<128x128xbf16>,
    %c0_29 = arith.constant 0 : index
    %c0_30 = arith.constant 0 : index
    %43 = vector.load %arg5[%c0_29, %c0_30] : memref<128x896xbf16, #tpu.memory_space<vmem>>, vector<128x896xbf16>
    %c0_31 = arith.constant 0 : index
    %c0_32 = arith.constant 0 : index
    %44 = vector.load %arg3[%c0_31, %c0_32] : memref<896x256xbf16, #tpu.memory_space<vmem>>, vector<896x256xbf16>
    %cst = arith.constant dense<0.000000e+00> : vector<128x256xf32>
    %45 = tpu.matmul %43, %44, %cst {dimension_numbers = #tpu.dot_dimension_numbers<[1], [0], [0], [1], [0, 0, 1, 1], [], []>} : vector<128x896xbf16>, vector<896x256xbf16>, vector<128x256xf32> -> vector<128x256xf32>
    %cst_33 = arith.constant 0.000000e+00 : f32
    %46 = vector.broadcast %cst_33 : f32 to vector<128x256xf32>
    %47 = arith.maximumf %45, %46 : vector<128x256xf32>
    %c0_34 = arith.constant 0 : index
    %c0_35 = arith.constant 0 : index
    %48 = vector.load %arg4[%c0_34, %c0_35] : memref<128x256xf32, #tpu.memory_space<vmem>>, vector<128x256xf32>
    tpu.vector_store %arg4[%c0_34, %c0_35], %47 {strides = array<i32>} : memref<128x256xf32, #tpu.memory_space<vmem>>, vector<128x256xf32>,
    return
  }
  func.func @transform_0(%arg0: i32, %arg1: i32) -> (i32, i32, i32, i32) {
    %c0_i32 = arith.constant 0 : i32
    %c0_i32_0 = arith.constant 0 : i32
    %c0_i32_1 = arith.constant 0 : i32
    %c0_i32_2 = arith.constant 0 : i32
    return %arg0, %c0_i32, %c0_i32_0, %c0_i32_1 : i32, i32, i32, i32
  }
  func.func @transform_1(%arg0: i32, %arg1: i32) -> (i32, i32) {
    %c0_i32 = arith.constant 0 : i32
    %c0_i32_0 = arith.constant 0 : i32
    %c0_i32_1 = arith.constant 0 : i32
    return %c0_i32, %c0_i32_0 : i32, i32
  }
  func.func @transform_2(%arg0: i32, %arg1: i32) -> (i32, i32) {
    %c2_i32 = arith.constant 2 : i32
    %0 = arith.muli %arg0, %c2_i32 : i32
    %1 = arith.addi %0, %arg1 : i32
    %c0_i32 = arith.constant 0 : i32
    %c0_i32_0 = arith.constant 0 : i32
    return %1, %c0_i32 : i32, i32
  }
}

</mosaic_0001>

<bundles_post_ra>
// kernel: model_forward.1
= control target key start
LH: loop header
LB: loop body
LE: loop exit
PB: predicated region body
PF: predicated region fallthrough
CT: control target
= control target key end

     0   :  { %s2705_s9 = smov 0   ;;  %s2707_s10 = smov 0   ;;  %s3449_s0 = inlined_call_operand.vmem [shape: bf16[2,40,16,128], index: 0, kind: input, shape index: {}]   ;;  %s3450_s1 = inlined_call_operand.vmem [shape: bf16[896,256], index: 1, kind: input, shape index: {}]   ;;  %s3451_s2 = inlined_call_operand.vmem [shape: f32[512,256], index: 2, kind: output, shape index: {}]  }
   0x1   :  { %s2709_s11 = smov 0   ;;  %s2711_s12 = smov 0  }
   0x2   :  { %s2713_s13 = smov 0  }
   0x3 LB: > { %s21_s14 = sadd.s32 1, %s2679_s11  ;;  %s24_s15 = sadd.s32 1, %s2683_s12  ;;  %s2687_s13 = sphi %s2713_s13, %s12_s13   ;;  %s2683_s12 = sphi %s2711_s12, %s3481_s12   ;;  %s2679_s11 = sphi %s2709_s11, %s3480_s11   ;;  %s2675_s10 = sphi %s2707_s10, %s3479_s10   ;;  %s2671_s9 = sphi %s2705_s9, %s3478_s9  }
   0x4   : > { %p22_p0 = scmp.ge.s32.totalorder %s21_s14, 2  ;;  %p2070_p1 = scmp.ge.s32.totalorder %s2687_s13, 1 }
   0x5   : > { %p128_p2 = scmp.lt.s32.totalorder %s2687_s13, 5 }
   0x6   : > { %s3483_s14 = smov (%p22_p0, %s21_s14), 0  ;;  %s3485_s15 = smov (!%p22_p0, %s24_s15), %s2683_s12 }
   0x7   : > { %p129_p3 = pnand %p2070_p1, %p128_p2  ;;  %p26_p4 = scmp.ge.s32.totalorder %s3485_s15, 2 }
   0x9   : > { %s3487_s15 = smov (%p26_p4, %s3485_s15), 0  ;;  %132 = sbr.rel (%p129_p3) target bundleno = 405 (0x195), region = 28 }
   0xe   : > { %v2408_v0 = vld [vmem:[%s3450_s1 + $0x74] ss:$8 sps:$4 sm:$0xff]   ;;  %v2412_v2 = vld [vmem:[%s3450_s1 + $0x70] ss:$8 sps:$4 sm:$0xff]   ;;  %v2414_v4 = vld [vmem:[%s3450_s1 + $0x64] ss:$8 sps:$4 sm:$0xff]  }
   0xf   : > { %v2410_v1 = vld [vmem:[%s3450_s1 + $0x174] ss:$8 sps:$4 sm:$0xff]   ;;  %1446 = vmatprep.subr.bf16.mxu0 %v2408_v0  ;;  %v2413_v3 = vld [vmem:[%s3450_s1 + $0x170] ss:$8 sps:$4 sm:$0xff]   ;;  %v2416_v5 = vld [vmem:[%s3450_s1 + $0x164] ss:$8 sps:$4 sm:$0xff]  }
  0x10   : > { %1559 = vmatprep.subr.bf16.mxu1 %v2410_v1  ;;  %1447 = vmatpush1.bf16.msra.mxu0 %v2412_v2  ;;  %v2418_v6 = vld [vmem:[%s3450_s1 + $0x60] ss:$8 sps:$4 sm:$0xff]   ;;  %v2420_v8 = vld [vmem:[%s3450_s1 + $0x54] ss:$8 sps:$4 sm:$0xff]   ;;  %v2424_v10 = vld [vmem:[%s3450_s1 + $0x50] ss:$8 sps:$4 sm:$0xff]  }
  0x11   : > { %1560 = vmatpush1.bf16.msra.mxu1 %v2413_v3  ;;  %1448 = vmatprep.subr.bf16.mxu0 %v2414_v4  ;;  %v2419_v7 = vld [vmem:[%s3450_s1 + $0x160] ss:$8 sps:$4 sm:$0xff]   ;;  %v2422_v9 = vld [vmem:[%s3450_s1 + $0x154] ss:$8 sps:$4 sm:$0xff]   ;;  %v2425_v11 = vld [vmem:[%s3450_s1 + $0x150] ss:$8 sps:$4 sm:$0xff]  }
  0x12   : > { %1561 = vmatprep.subr.bf16.mxu1 %v2416_v5  ;;  %v2426_v12 = vld [vmem:[%s3450_s1 + $0x44] ss:$8 sps:$4 sm:$0xff]   ;;  %v2430_v14 = vld [vmem:[%s3450_s1 + $0x40] ss:$8 sps:$4 sm:$0xff]   ;;  %v2432_v16 = vld [vmem:[%s3450_s1 + $0x34] ss:$8 sps:$4 sm:$0xff]  }
  0x13   : > { %v2428_v13 = vld [vmem:[%s3450_s1 + $0x144] ss:$8 sps:$4 sm:$0xff]   ;;  %v2431_v15 = vld [vmem:[%s3450_s1 + $0x140] ss:$8 sps:$4 sm:$0xff]   ;;  %v2434_v17 = vld [vmem:[%s3450_s1 + $0x134] ss:$8 sps:$4 sm:$0xff]  }
  0x14   : > { %1449 = vmatpush1.bf16.msra.mxu0 %v2418_v6  ;;  %v2436_v18 = vld [vmem:[%s3450_s1 + $0x30] ss:$8 sps:$4 sm:$0xff]   ;;  %v2438_v20 = vld [vmem:[%s3450_s1 + $0x24] ss:$8 sps:$4 sm:$0xff]   ;;  %v2442_v22 = vld [vmem:[%s3450_s1 + $0x20] ss:$8 sps:$4 sm:$0xff]  }
  0x15   : > { %1562 = vmatpush1.bf16.msra.mxu1 %v2419_v7  ;;  %1450 = vmatprep.subr.bf16.mxu0 %v2420_v8  ;;  %v2437_v19 = vld [vmem:[%s3450_s1 + $0x130] ss:$8 sps:$4 sm:$0xff]   ;;  %v2440_v21 = vld [vmem:[%s3450_s1 + $0x124] ss:$8 sps:$4 sm:$0xff]   ;;  %v2443_v23 = vld [vmem:[%s3450_s1 + $0x120] ss:$8 sps:$4 sm:$0xff]  }
  0x16   : > { %1563 = vmatprep.subr.bf16.mxu1 %v2422_v9  ;;  %v2444_v24 = vld [vmem:[%s3450_s1 + $0x14] ss:$8 sps:$4 sm:$0xff]   ;;  %v2448_v26 = vld [vmem:[%s3450_s1 + $0x10] ss:$8 sps:$4 sm:$0xff]   ;;  %v2450_v28 = vld [vmem:[%s3450_s1 + $0x4] ss:$8 sps:$4 sm:$0xff]  }
  0x17   : > { %v2446_v25 = vld [vmem:[%s3450_s1 + $0x114] ss:$8 sps:$4 sm:$0xff]   ;;  %v2449_v27 = vld [vmem:[%s3450_s1 + $0x110] ss:$8 sps:$4 sm:$0xff]   ;;  %p153_p5 = scmp.lt.s32.totalorder %s2675_s10, 1 }
  0x18   : > { %1451 = vmatpush1.bf16.msra.mxu0 %v2424_v10  ;;  %v2452_v29 = vld [vmem:[%s3450_s1 + $0x104] ss:$8 sps:$4 sm:$0xff]   ;;  %v2454_v30 = vld [vmem:[%s3450_s1] ss:$8 sps:$4 sm:$0xff]   ;;  %v2456_v32 = vld [vmem:[%s3450_s1 + $0xf4] ss:$8 sps:$4 sm:$0xff]  }
  0x19   : > { %1564 = vmatpush1.bf16.msra.mxu1 %v2425_v11  ;;  %1452 = vmatprep.subr.bf16.mxu0 %v2426_v12  ;;  %v2455_v31 = vld [vmem:[%s3450_s1 + $0x100] ss:$8 sps:$4 sm:$0xff]   ;;  %s154_s19 = scalar_select %p153_p5, %s2675_s10, 1  ;;  %v2458_v33 = vld [vmem:[%s3450_s1 + $0x1f4] ss:$8 sps:$4 sm:$0xff]  }
  0x1a   : > { %1565 = vmatprep.subr.bf16.mxu1 %v2428_v13  ;;  %v2460_v34 = vld [vmem:[%s3450_s1 + $0xf0] ss:$8 sps:$4 sm:$0xff]   ;;  %v2462_v36 = vld [vmem:[%s3450_s1 + $0xe4] ss:$8 sps:$4 sm:$0xff]   ;;  %v2466_v38 = vld [vmem:[%s3450_s1 + $0xe0] ss:$8 sps:$4 sm:$0xff]  }
  0x1b   : > { %v2461_v35 = vld [vmem:[%s3450_s1 + $0x1f0] ss:$8 sps:$4 sm:$0xff]   ;;  %s2366_s28 = smul.u32 320, %s154_s19  ;;  %v2464_v37 = vld [vmem:[%s3450_s1 + $0x1e4] ss:$8 sps:$4 sm:$0xff]   ;;  %s2359_s19 = sshll.u32 %s2671_s9, 6 }
  0x1c   : > { %1453 = vmatpush1.bf16.msra.mxu0 %v2430_v14  ;;  %v2467_v39 = vld [vmem:[%s3450_s1 + $0x1e0] ss:$8 sps:$4 sm:$0xff]   ;;  %v2468_v40 = vld [vmem:[%s3450_s1 + $0xd4] ss:$8 sps:$4 sm:$0xff]   ;;  %v2472_v42 = vld [vmem:[%s3450_s1 + $0xd0] ss:$8 sps:$4 sm:$0xff]  }
  0x1d   : > { %1566 = vmatpush1.bf16.msra.mxu1 %v2431_v15  ;;  %1454 = vmatprep.subr.bf16.mxu0 %v2432_v16  ;;  %s157_s18 = scalar_lea.vmem %s3449_s0, %s2366_s28  ;;  %v2470_v41 = vld [vmem:[%s3450_s1 + $0x1d4] ss:$8 sps:$4 sm:$0xff]   ;;  %v2473_v43 = vld [vmem:[%s3450_s1 + $0x1d0] ss:$8 sps:$4 sm:$0xff]   ;;  %v2474_v44 = vld [vmem:[%s3450_s1 + $0xc4] ss:$8 sps:$4 sm:$0xff]  }
  0x1e   : > { %1567 = vmatprep.subr.bf16.mxu1 %v2434_v17  ;;  %s2877_s26 = scalar_lea.vmem %s157_s18, %s2359_s19  ;;  %v2476_v45 = vld [vmem:[%s3450_s1 + $0x1c4] ss:$8 sps:$4 sm:$0xff]   ;;  %v2478_v46 = vld [vmem:[%s3450_s1 + $0xc0] ss:$8 sps:$4 sm:$0xff]   ;;  %v2480_v49 = vld [vmem:[%s3450_s1 + $0xb4] ss:$8 sps:$4 sm:$0xff]  }
  0x1f   : > { %v2479_v47 = vld [vmem:[%s3450_s1 + $0x1c0] ss:$8 sps:$4 sm:$0xff]   ;;  %v2482_v50 = vld [vmem:[%s3450_s1 + $0x1b4] ss:$8 sps:$4 sm:$0xff]   ;;  %v175_v51 = vld [vmem:[%s2877_s26 + $0x4] sm:$0xf] }
  0x20   : > { %1455 = vmatpush1.bf16.msra.mxu0 %v2436_v18  ;;  %v174_v48 = vld [vmem:[%s2877_s26] sm:$0xf]  ;;  %v2082_v53 = vld [vmem:[%s2877_s26 + $0x24] sm:$0xf]  ;;  %191 = vst [vmem:[#allocation2 + $0x1c] sm:$0xf] %v175_v51 }
  0x21   : > { %1568 = vmatpush1.bf16.msra.mxu1 %v2437_v19  ;;  %1456 = vmatprep.subr.bf16.mxu0 %v2438_v20  ;;  %190 = vst [vmem:[#allocation2] sm:$0xf] %v174_v48  ;;  %v2081_v52 = vld [vmem:[%s2877_s26 + $0x20] sm:$0xf]  ;;  %227 = vst [vmem:[#allocation2 + $0x20] sm:$0xf] %v2082_v53 }
  0x22   : > { %1569 = vmatprep.subr.bf16.mxu1 %v2440_v21  ;;  %226 = vst [vmem:[#allocation2 + $0x4] sm:$0xf] %v2081_v52  ;;  %v2099_v54 = vld [vmem:[%s2877_s26 + $0x40] sm:$0xf]  ;;  %v2100_v55 = vld [vmem:[%s2877_s26 + $0x44] sm:$0xf] }
  0x23   : > { %v2117_v56 = vld [vmem:[%s2877_s26 + $0x60] sm:$0xf]  ;;  %262 = vst [vmem:[#allocation2 + $0x8] sm:$0xf] %v2099_v54  ;;  %263 = vst [vmem:[#allocation2 + $0x24] sm:$0xf] %v2100_v55 }
  0x24   : > { %1457 = vmatpush1.bf16.msra.mxu0 %v2442_v22  ;;  %v2118_v57 = vld [vmem:[%s2877_s26 + $0x64] sm:$0xf]  ;;  %298 = vst [vmem:[#allocation2 + $0xc] sm:$0xf] %v2117_v56  ;;  %v2484_v58 = vld [vmem:[%s3450_s1 + $0xb0] ss:$8 sps:$4 sm:$0xff]  }
  0x25   : > { %1570 = vmatpush1.bf16.msra.mxu1 %v2443_v23  ;;  %1458 = vmatprep.subr.bf16.mxu0 %v2444_v24  ;;  %299 = vst [vmem:[#allocation2 + $0x28] sm:$0xf] %v2118_v57  ;;  %v2485_v59 = vld [vmem:[%s3450_s1 + $0x1b0] ss:$8 sps:$4 sm:$0xff]   ;;  %v2486_v60 = vld [vmem:[%s3450_s1 + $0xa4] ss:$8 sps:$4 sm:$0xff]  }
  0x26   : > { %1571 = vmatprep.subr.bf16.mxu1 %v2446_v25  ;;  %v2488_v61 = vld [vmem:[%s3450_s1 + $0x1a4] ss:$8 sps:$4 sm:$0xff]   ;;  %v176_v62 = vld [vmem:[%s2877_s26 + $0x8] sm:$0xf]  ;;  %v2492_v5 = vld [vmem:[%s3450_s1 + $0x94] ss:$8 sps:$4 sm:$0xff]  }
  0x27   : > { %v177_v63 = vld [vmem:[%s2877_s26 + $0xc] sm:$0xf]  ;;  %v2490_v0 = vld [vmem:[%s3450_s1 + $0xa0] ss:$8 sps:$4 sm:$0xff]   ;;  %192 = vst [vmem:[#allocation2 + $0x38] sm:$0xf] %v176_v62 }
  0x28   : > { %1459 = vmatpush1.bf16.msra.mxu0 %v2448_v26  ;;  %v2491_v1 = vld [vmem:[%s3450_s1 + $0x1a0] ss:$8 sps:$4 sm:$0xff]   ;;  %193 = vst [vmem:[#allocation2 + $0x54] sm:$0xf] %v177_v63  ;;  %v2084_v3 = vld [vmem:[%s2877_s26 + $0x2c] sm:$0xf] }
  0x29   : > { %1572 = vmatpush1.bf16.msra.mxu1 %v2449_v27  ;;  %1460 = vmatprep.subr.bf16.mxu0 %v2450_v28  ;;  %v2083_v2 = vld [vmem:[%s2877_s26 + $0x28] sm:$0xf]  ;;  %229 = vst [vmem:[#allocation2 + $0x58] sm:$0xf] %v2084_v3  ;;  %v2506_v6 = vld [vmem:[#allocation2 + $0x4] ss:$28 sps:$4 sm:$0xff]  }
  0x2a   : > { %1573 = vmatprep.subr.bf16.mxu1 %v2452_v29  ;;  %v2101_v4 = vld [vmem:[%s2877_s26 + $0x48] sm:$0xf]  ;;  %228 = vst [vmem:[#allocation2 + $0x3c] sm:$0xf] %v2083_v2  ;;  %v2102_v7 = vld [vmem:[%s2877_s26 + $0x4c] sm:$0xf]  ;;  %1478 = vmatprep.mubr.bf16.mxu0 %v2506_v6 }
  0x2b   : > { %264 = vst [vmem:[#allocation2 + $0x40] sm:$0xf] %v2101_v4  ;;  %v2494_v8 = vld [vmem:[%s3450_s1 + $0x194] ss:$8 sps:$4 sm:$0xff]   ;;  %265 = vst [vmem:[#allocation2 + $0x5c] sm:$0xf] %v2102_v7 }
  0x2c   : > { %1461 = vmatpush1.bf16.msra.mxu0 %v2454_v30  ;;  %v2509_v9 = vld [vmem:[#allocation2 + $0xc] ss:$28 sps:$4 sm:$0xff]   ;;  %v2496_v12 = vld [vmem:[%s3450_s1 + $0x90] ss:$8 sps:$4 sm:$0xff]   ;;  %v2512_v18 = vld [vmem:[%s3450_s1 + $0x274] ss:$8 sps:$4 sm:$0xff]  }
  0x2d   : > { %1574 = vmatpush1.bf16.msra.mxu1 %v2455_v31  ;;  %1462 = vmatprep.subr.bf16.mxu0 %v2456_v32  ;;  %v2119_v10 = vld [vmem:[%s2877_s26 + $0x68] sm:$0xf]  ;;  %v2120_v11 = vld [vmem:[%s2877_s26 + $0x6c] sm:$0xf]  ;;  %v2497_v13 = vld [vmem:[%s3450_s1 + $0x190] ss:$8 sps:$4 sm:$0xff]  }
  0x2e   : > { %1575 = vmatprep.subr.bf16.mxu1 %v2458_v33  ;;  %1591 = vmatprep.mubr.bf16.mxu1 %v2509_v9  ;;  %300 = vst [vmem:[#allocation2 + $0x44] sm:$0xf] %v2119_v10  ;;  %301 = vst [vmem:[#allocation2 + $0x60] sm:$0xf] %v2120_v11  ;;  %v2498_v14 = vld [vmem:[%s3450_s1 + $0x84] ss:$8 sps:$4 sm:$0xff]  }
  0x2f   : > { %v2500_v15 = vld [vmem:[%s3450_s1 + $0x184] ss:$8 sps:$4 sm:$0xff]   ;;  %v2502_v16 = vld [vmem:[%s3450_s1 + $0x80] ss:$8 sps:$4 sm:$0xff]   ;;  %v2515_v19 = vld [vmem:[%s3450_s1 + $0x374] ss:$8 sps:$4 sm:$0xff]  }
  0x30   : > { %1463 = vmatpush2.bf16.msra.mxu0 %v2460_v34  ;;  %v2503_v17 = vld [vmem:[%s3450_s1 + $0x180] ss:$8 sps:$4 sm:$0xff]   ;;  %v178_v20 = vld [vmem:[%s2877_s26 + $0x10] sm:$0xf]  ;;  %v179_v21 = vld [vmem:[%s2877_s26 + $0x14] sm:$0xf] }
  0x31   : > { %1576 = vmatpush2.bf16.msra.mxu1 %v2461_v35  ;;  %1464 = vmatprep.subr.bf16.mxu0 %v2462_v36  ;;  %194 = vst [vmem:[#allocation2 + $0x70] sm:$0xf] %v178_v20  ;;  %v2085_v22 = vld [vmem:[%s2877_s26 + $0x30] sm:$0xf]  ;;  %v2086_v23 = vld [vmem:[%s2877_s26 + $0x34] sm:$0xf] }
  0x32   : > { %1577 = vmatprep.subr.bf16.mxu1 %v2464_v37  ;;  %195 = vst [vmem:[#allocation2 + $0x8c] sm:$0xf] %v179_v21  ;;  %230 = vst [vmem:[#allocation2 + $0x74] sm:$0xf] %v2085_v22  ;;  %v2103_v24 = vld [vmem:[%s2877_s26 + $0x50] sm:$0xf] }
  0x33   : > { %231 = vst [vmem:[#allocation2 + $0x90] sm:$0xf] %v2086_v23  ;;  %v2104_v25 = vld [vmem:[%s2877_s26 + $0x54] sm:$0xf]  ;;  %v2121_v26 = vld [vmem:[%s2877_s26 + $0x70] sm:$0xf] }
  0x34   : > { %1465 = vmatpush2.bf16.msra.mxu0 %v2466_v38  ;;  %v2504_v27 = vld [vmem:[#allocation2] ss:$28 sps:$4 sm:$0xff]   ;;  %v2510_v28 = vld [vmem:[%s3450_s1 + $0x270] ss:$8 sps:$4 sm:$0xff]   ;;  %266 = vst [vmem:[#allocation2 + $0x78] sm:$0xf] %v2103_v24 }
  0x35   : > { %1578 = vmatpush2.bf16.msra.mxu1 %v2467_v39  ;;  %1466 = vmatprep.subr.bf16.mxu0 %v2468_v40  ;;  %v2513_v29 = vld [vmem:[%s3450_s1 + $0x370] ss:$8 sps:$4 sm:$0xff]   ;;  %267 = vst [vmem:[#allocation2 + $0x94] sm:$0xf] %v2104_v25  ;;  %302 = vst [vmem:[#allocation2 + $0x7c] sm:$0xf] %v2121_v26 }
  0x36   : > { %1579 = vmatprep.subr.bf16.mxu1 %v2470_v41  ;;  %v2507_v30 = vld [vmem:[#allocation2 + $0x8] ss:$28 sps:$4 sm:$0xff]   ;;  %v2122_v31 = vld [vmem:[%s2877_s26 + $0x74] sm:$0xf]  ;;  %v2519_v34 = vld [vmem:[#allocation2 + $0x3c] ss:$28 sps:$4 sm:$0xff]  }
  0x37   : > { %v2518_v32 = vld [vmem:[%s3450_s1 + $0x264] ss:$8 sps:$4 sm:$0xff]   ;;  %303 = vst [vmem:[#allocation2 + $0x98] sm:$0xf] %v2122_v31  ;;  %v2516_v35 = vld [vmem:[%s3450_s1 + $0x260] ss:$8 sps:$4 sm:$0xff]  }
  0x38   : > { %1467 = vmatpush2.bf16.msra.mxu0 %v2472_v42  ;;  %v2529_v33 = vld [vmem:[%s3450_s1 + $0x364] ss:$8 sps:$4 sm:$0xff]   ;;  %v2526_v37 = vld [vmem:[%s3450_s1 + $0x254] ss:$8 sps:$4 sm:$0xff]   ;;  %v2527_v38 = vld [vmem:[%s3450_s1 + $0x360] ss:$8 sps:$4 sm:$0xff]  }
  0x39   : > { %1580 = vmatpush2.bf16.msra.mxu1 %v2473_v43  ;;  %1468 = vmatprep.subr.bf16.mxu0 %v2474_v44  ;;  %v2521_v36 = vld [vmem:[#allocation2 + $0x44] ss:$28 sps:$4 sm:$0xff]   ;;  %v180_v39 = vld [vmem:[%s2877_s26 + $0x18] sm:$0xf]  ;;  %v2543_v42 = vld [vmem:[%s3450_s1 + $0x354] ss:$8 sps:$4 sm:$0xff]  }
  0x3a   : > { %1581 = vmatprep.subr.bf16.mxu1 %v2476_v45  ;;  %v430_v40 = vld [vmem:[#allocation2 + $0x38] sm:$0xff]  ;;  %196 = vst [vmem:[#allocation2 + $0xa8] sm:$0xf] %v180_v39  ;;  %v2533_v51 = vld [vmem:[#allocation2 + $0x74] ss:$28 sps:$4 sm:$0xff]  }
  0x3b   : > { %v434_v41 = vld [vmem:[#allocation2 + $0x54] sm:$0xff]  ;;  %v181_v43 = vld [vmem:[%s2877_s26 + $0x1c] sm:$0xf]  ;;  %v2532_v54 = vld [vmem:[%s3450_s1 + $0x244] ss:$8 sps:$4 sm:$0xff]  }
  0x3c   : > { %1469 = vmatpush2.bf16.msra.mxu0 %v2478_v46  ;;  %v2087_v44 = vld [vmem:[%s2877_s26 + $0x38] sm:$0xf]  ;;  %197 = vst [vmem:[#allocation2 + $0xc4] sm:$0xf] %v181_v43  ;;  %v2088_v46 = vld [vmem:[%s2877_s26 + $0x3c] sm:$0xf] }
  0x3d   : > { %1582 = vmatpush2.bf16.msra.mxu1 %v2479_v47  ;;  %1470 = vmatprep.subr.bf16.mxu0 %v2480_v49  ;;  %v2524_v45 = vld [vmem:[%s3450_s1 + $0x250] ss:$8 sps:$4 sm:$0xff]   ;;  %232 = vst [vmem:[#allocation2 + $0xac] sm:$0xf] %v2087_v44  ;;  %v2106_v48 = vld [vmem:[%s2877_s26 + $0x5c] sm:$0xf]  ;;  %v2194_v49 = vcombine.low %v430_v40, %v434_v41 }
  0x3e   : > { %1583 = vmatprep.subr.bf16.mxu1 %v2482_v50  ;;  %v2105_v47 = vld [vmem:[%s2877_s26 + $0x58] sm:$0xf]  ;;  %v2523_v50 = vld [vmem:[#allocation2 + $0x40] ss:$28 sps:$4 sm:$0xff]   ;;  %233 = vst [vmem:[#allocation2 + $0xc8] sm:$0xf] %v2088_v46 }
  0x3f   : > { %268 = vst [vmem:[#allocation2 + $0xb0] sm:$0xf] %v2105_v47  ;;  %269 = vst [vmem:[#allocation2 + $0xcc] sm:$0xf] %v2106_v48  ;;  %v2123_v52 = vld [vmem:[%s2877_s26 + $0x78] sm:$0xf] }
  0x40   : > { %1471 = vmatpush2.bf16.msra.mxu0 %v2484_v58  ;;  %v2124_v53 = vld [vmem:[%s2877_s26 + $0x7c] sm:$0xf]  ;;  %304 = vst [vmem:[#allocation2 + $0xb4] sm:$0xf] %v2123_v52  ;;  %v2530_v56 = vld [vmem:[%s3450_s1 + $0x240] ss:$8 sps:$4 sm:$0xff]  }
  0x41   : > { %1584 = vmatpush2.bf16.msra.mxu1 %v2485_v59  ;;  %1472 = vmatprep.subr.bf16.mxu0 %v2486_v60  ;;  %v2535_v55 = vld [vmem:[#allocation2 + $0x7c] ss:$28 sps:$4 sm:$0xff]   ;;  %305 = vst [vmem:[#allocation2 + $0xd0] sm:$0xf] %v2124_v53  ;;  %v2557_v58 = vld [vmem:[%s3450_s1 + $0x344] ss:$8 sps:$4 sm:$0xff]  }
  0x42   : > { %1585 = vmatprep.subr.bf16.mxu1 %v2488_v61  ;;  %v2541_v57 = vld [vmem:[%s3450_s1 + $0x350] ss:$8 sps:$4 sm:$0xff]   ;;  %v182_v61 = vld [vmem:[%s2877_s26 + $0x20] sm:$0xf]  ;;  %v2540_v62 = vld [vmem:[%s3450_s1 + $0x234] ss:$8 sps:$4 sm:$0xff]  }
  0x43   : > { %v438_v59 = vld [vmem:[#allocation2 + $0x70] sm:$0xff]  ;;  %v183_v63 = vld [vmem:[%s2877_s26 + $0x24] sm:$0xf]  ;;  %198 = vst [vmem:[#allocation2 + $0xe0] sm:$0xf] %v182_v61 }
  0x44   : > { %1473 = vmatpush2.bf16.msra.mxu0 %v2490_v0  ;;  %v442_v60 = vld [vmem:[#allocation2 + $0x8c] sm:$0xff]  ;;  %v2089_v0 = vld [vmem:[%s2877_s26 + $0x40] sm:$0xf]  ;;  %199 = vst [vmem:[#allocation2 + $0xfc] sm:$0xf] %v183_v63 }
  0x45   : > { %1586 = vmatpush2.bf16.msra.mxu1 %v2491_v1  ;;  %1474 = vmatprep.subr.bf16.mxu0 %v2492_v5  ;;  %v2537_v1 = vld [vmem:[#allocation2 + $0x78] ss:$28 sps:$4 sm:$0xff]   ;;  %v2555_v3 = vld [vmem:[%s3450_s1 + $0x340] ss:$8 sps:$4 sm:$0xff]   ;;  %v2090_v4 = vld [vmem:[%s2877_s26 + $0x44] sm:$0xf]  ;;  %v2201_v5 = vcombine.low %v438_v59, %v442_v60 }
  0x46   : > { %1587 = vmatprep.subr.bf16.mxu1 %v2494_v8  ;;  %v2538_v2 = vld [vmem:[%s3450_s1 + $0x230] ss:$8 sps:$4 sm:$0xff]   ;;  %234 = vst [vmem:[#allocation2 + $0xe4] sm:$0xf] %v2089_v0  ;;  %v2546_v6 = vld [vmem:[%s3450_s1 + $0x224] ss:$8 sps:$4 sm:$0xff]  }
  0x47   : > { %235 = vst [vmem:[#allocation2 + $0x100] sm:$0xf] %v2090_v4  ;;  %v2107_v7 = vld [vmem:[%s2877_s26 + $0x60] sm:$0xf]  ;;  %v2108_v8 = vld [vmem:[%s2877_s26 + $0x64] sm:$0xf] }
  0x48   : > { %1475 = vmatpush2.bf16.msra.mxu0 %v2496_v12  ;;  %v2125_v9 = vld [vmem:[%s2877_s26 + $0x80] sm:$0xf]  ;;  %v2547_v10 = vld [vmem:[#allocation2 + $0xac] ss:$28 sps:$4 sm:$0xff]   ;;  %270 = vst [vmem:[#allocation2 + $0xe8] sm:$0xf] %v2107_v7 }
  0x49   : > { %1588 = vmatpush2.bf16.msra.mxu1 %v2497_v13  ;;  %1476 = vmatprep.subr.bf16.mxu0 %v2498_v14  ;;  %271 = vst [vmem:[#allocation2 + $0x104] sm:$0xf] %v2108_v8  ;;  %306 = vst [vmem:[#allocation2 + $0xec] sm:$0xf] %v2125_v9  ;;  %v2549_v11 = vld [vmem:[#allocation2 + $0xb4] ss:$28 sps:$4 sm:$0xff]  }
  0x4a   : > { %1589 = vmatprep.subr.bf16.mxu1 %v2500_v15  ;;  %v2126_v12 = vld [vmem:[%s2877_s26 + $0x84] sm:$0xf]  ;;  %v2544_v13 = vld [vmem:[%s3450_s1 + $0x220] ss:$8 sps:$4 sm:$0xff]   ;;  %v2552_v20 = vld [vmem:[%s3450_s1 + $0x210] ss:$8 sps:$4 sm:$0xff]  }
  0x4b   : > { %v446_v14 = vld [vmem:[#allocation2 + $0xa8] sm:$0xff]  ;;  %307 = vst [vmem:[#allocation2 + $0x108] sm:$0xf] %v2126_v12  ;;  %v2566_v39 = vld [vmem:[%s3450_s1 + $0x2f0] ss:$8 sps:$4 sm:$0xff]  }
  0x4c   : > { %1477 = vmatpush2.bf16.msra.mxu0 %v2502_v16  ;;  %v450_v15 = vld [vmem:[#allocation2 + $0xc4] sm:$0xff]  ;;  %v2569_v16 = vld [vmem:[%s3450_s1 + $0x330] ss:$8 sps:$4 sm:$0xff]   ;;  %v185_v24 = vld [vmem:[%s2877_s26 + $0x2c] sm:$0xf] }
  0x4d   : > { %1590 = vmatpush2.bf16.msra.mxu1 %v2503_v17  ;;  %1672 = vmatprep.subr.bf16.mxu0 %v2512_v18  ;;  %v2571_v17 = vld [vmem:[%s3450_s1 + $0x334] ss:$8 sps:$4 sm:$0xff]   ;;  %v184_v22 = vld [vmem:[%s2877_s26 + $0x28] sm:$0xf]  ;;  %v2208_v23 = vcombine.low %v446_v14, %v450_v15  ;;  %201 = vst [vmem:[#allocation2 + $0x134] sm:$0xf] %v185_v24 }
  0x4e   : > { %1785 = vmatprep.subr.bf16.mxu1 %v2515_v19  ;;  %v2554_v18 = vld [vmem:[%s3450_s1 + $0x214] ss:$8 sps:$4 sm:$0xff]   ;;  %v2551_v19 = vld [vmem:[#allocation2 + $0xb0] ss:$28 sps:$4 sm:$0xff]   ;;  %v2561_v21 = vld [vmem:[#allocation2 + $0xe4] ss:$28 sps:$4 sm:$0xff]  }
  0x4f   : > { %1479 = vmatmul.mubr.bf16.vlgmr.msra.gmra.mxu0 %v2504_v27  ;;  %200 = vst [vmem:[#allocation2 + $0x118] sm:$0xf] %v184_v22  ;;  %v2091_v25 = vld [vmem:[%s2877_s26 + $0x48] sm:$0xf]  ;;  %v2092_v26 = vld [vmem:[%s2877_s26 + $0x4c] sm:$0xf] }
  0x50   : > { %1592 = vmatmul.mubr.bf16.vlgmr.msra.gmra.mxu1 %v2507_v30  ;;  %1673 = vmatpush1.bf16.msra.mxu0 %v2510_v28  ;;  %236 = vst [vmem:[#allocation2 + $0x11c] sm:$0xf] %v2091_v25  ;;  %v2109_v27 = vld [vmem:[%s2877_s26 + $0x68] sm:$0xf]  ;;  %v2110_v28 = vld [vmem:[%s2877_s26 + $0x6c] sm:$0xf] }
  0x51   : > { %1786 = vmatpush1.bf16.msra.mxu1 %v2513_v29  ;;  %1674 = vmatprep.subr.bf16.mxu0 %v2518_v32  ;;  %v2560_v29 = vld [vmem:[%s3450_s1 + $0x204] ss:$8 sps:$4 sm:$0xff]   ;;  %237 = vst [vmem:[#allocation2 + $0x138] sm:$0xf] %v2092_v26  ;;  %272 = vst [vmem:[#allocation2 + $0x120] sm:$0xf] %v2109_v27 }
  0x52   : > { %1488 = vmatprep.mubr.bf16.mxu0 %v2519_v34  ;;  %1601 = vmatprep.mubr.bf16.mxu1 %v2521_v36  ;;  %v2563_v30 = vld [vmem:[#allocation2 + $0xec] ss:$28 sps:$4 sm:$0xff]   ;;  %273 = vst [vmem:[#allocation2 + $0x13c] sm:$0xf] %v2110_v28  ;;  %v454_v34 = vld [vmem:[#allocation2 + $0xe0] sm:$0xff] }
  0x53   : > { %1787 = vmatprep.subr.bf16.mxu1 %v2529_v33  ;;  %v2558_v31 = vld [vmem:[%s3450_s1 + $0x200] ss:$8 sps:$4 sm:$0xff]   ;;  %v2128_v33 = vld [vmem:[%s2877_s26 + $0x8c] sm:$0xf]  ;;  %v2568_v36 = vld [vmem:[%s3450_s1 + $0x2f4] ss:$8 sps:$4 sm:$0xff]  }
  0x54   : > { %1675 = vmatpush1.bf16.msra.mxu0 %v2516_v35  ;;  %v2127_v32 = vld [vmem:[%s2877_s26 + $0x88] sm:$0xf]  ;;  %v458_v35 = vld [vmem:[#allocation2 + $0xfc] sm:$0xff]  ;;  %309 = vst [vmem:[#allocation2 + $0x140] sm:$0xf] %v2128_v33 }
  0x55   : > { %1788 = vmatpush1.bf16.msra.mxu1 %v2527_v38  ;;  %1676 = vmatprep.subr.bf16.mxu0 %v2526_v37  ;;  %308 = vst [vmem:[#allocation2 + $0x124] sm:$0xf] %v2127_v32  ;;  %v2583_v37 = vld [vmem:[%s3450_s1 + $0x320] ss:$8 sps:$4 sm:$0xff]   ;;  %v2585_v38 = vld [vmem:[%s3450_s1 + $0x324] ss:$8 sps:$4 sm:$0xff]   ;;  %v2215_v41 = vcombine.low %v454_v34, %v458_v35 }
  0x56   : > { %1789 = vmatprep.subr.bf16.mxu1 %v2543_v42  ;;  %v186_v40 = vld [vmem:[%s2877_s26 + $0x30] sm:$0xf]  ;;  %v2565_v42 = vld [vmem:[#allocation2 + $0xe8] ss:$28 sps:$4 sm:$0xff]   ;;  %v187_v43 = vld [vmem:[%s2877_s26 + $0x34] sm:$0xf] }
  0x57   : > { %1489 = vmatmul.mubr.bf16.gmra.mxu0 %v2194_v49  ;;  %202 = vst [vmem:[#allocation2 + $0x150] sm:$0xf] %v186_v40  ;;  %v2093_v44 = vld [vmem:[%s2877_s26 + $0x50] sm:$0xf]  ;;  %203 = vst [vmem:[#allocation2 + $0x16c] sm:$0xf] %v187_v43 }
  0x58   : > { %1602 = vmatmul.mubr.bf16.gmra.mxu1 %v2523_v50  ;;  %1677 = vmatpush1.bf16.msra.mxu0 %v2524_v45  ;;  %v2574_v45 = vld [vmem:[%s3450_s1 + $0x2e4] ss:$8 sps:$4 sm:$0xff]   ;;  %v2575_v46 = vld [vmem:[#allocation2 + $0x11c] ss:$28 sps:$4 sm:$0xff]   ;;  %v2094_v47 = vld [vmem:[%s2877_s26 + $0x54] sm:$0xf] }
  0x59   : > { %1498 = vmatprep.mubr.bf16.mxu0 %v2533_v51  ;;  %1678 = vmatprep.subr.bf16.mxu0 %v2532_v54  ;;  %238 = vst [vmem:[#allocation2 + $0x154] sm:$0xf] %v2093_v44  ;;  %239 = vst [vmem:[#allocation2 + $0x170] sm:$0xf] %v2094_v47  ;;  %v2111_v48 = vld [vmem:[%s2877_s26 + $0x70] sm:$0xf] }
  0x5a   : > { %1611 = vmatprep.mubr.bf16.mxu1 %v2535_v55  ;;  %1790 = vmatpush1.bf16.msra.mxu1 %v2541_v57  ;;  %v2112_v49 = vld [vmem:[%s2877_s26 + $0x74] sm:$0xf]  ;;  %v2129_v50 = vld [vmem:[%s2877_s26 + $0x90] sm:$0xf]  ;;  %v2572_v51 = vld [vmem:[%s3450_s1 + $0x2e0] ss:$8 sps:$4 sm:$0xff]  }
  0x5b   : > { %1791 = vmatprep.subr.bf16.mxu1 %v2557_v58  ;;  %274 = vst [vmem:[#allocation2 + $0x158] sm:$0xf] %v2111_v48  ;;  %275 = vst [vmem:[#allocation2 + $0x174] sm:$0xf] %v2112_v49  ;;  %v2582_v53 = vld [vmem:[%s3450_s1 + $0x2d4] ss:$8 sps:$4 sm:$0xff]  }
  0x5c   : > { %1679 = vmatpush1.bf16.msra.mxu0 %v2530_v56  ;;  %v2577_v52 = vld [vmem:[#allocation2 + $0x124] ss:$28 sps:$4 sm:$0xff]   ;;  %310 = vst [vmem:[#allocation2 + $0x15c] sm:$0xf] %v2129_v50  ;;  %v2130_v54 = vld [vmem:[%s2877_s26 + $0x94] sm:$0xf] }
  0x5d   : > { %1680 = vmatprep.subr.bf16.mxu0 %v2540_v62  ;;  %v462_v55 = vld [vmem:[#allocation2 + $0x118] sm:$0xff]  ;;  %311 = vst [vmem:[#allocation2 + $0x178] sm:$0xf] %v2130_v54  ;;  %v2588_v62 = vld [vmem:[%s3450_s1 + $0x2c4] ss:$8 sps:$4 sm:$0xff]   ;;  %v2689_v54 = vmov 0  }
  0x5e   : > { %1792 = vmatpush1.bf16.msra.mxu1 %v2555_v3  ;;  %v466_v56 = vld [vmem:[#allocation2 + $0x134] sm:$0xff]  ;;  %v2579_v60 = vld [vmem:[#allocation2 + $0x120] ss:$28 sps:$4 sm:$0xff]   ;;  %v2154_v26 = vld [vmem:[%s2877_s26 + $0xa4] sm:$0xf] }
  0x5f   : > { %1499 = vmatmul.mubr.bf16.gmra.mxu0 %v2201_v5  ;;  %1793 = vmatprep.subr.bf16.mxu1 %v2571_v17  ;;  %v2597_v57 = vld [vmem:[%s3450_s1 + $0x310] ss:$8 sps:$4 sm:$0xff]   ;;  %v2599_v58 = vld [vmem:[%s3450_s1 + $0x314] ss:$8 sps:$4 sm:$0xff]   ;;  %v2222_v59 = vcombine.low %v462_v55, %v466_v56  ;;  %v2586_v3 = vld [vmem:[%s3450_s1 + $0x2c0] ss:$8 sps:$4 sm:$0xff]  }
  0x60   : > { %1612 = vmatmul.mubr.bf16.gmra.mxu1 %v2537_v1  ;;  %1681 = vmatpush1.bf16.msra.mxu0 %v2538_v2  ;;  %v2580_v61 = vld [vmem:[%s3450_s1 + $0x2d0] ss:$8 sps:$4 sm:$0xff]   ;;  %v189_v1 = vld [vmem:[%s2877_s26 + $0x3c] sm:$0xf]  ;;  %v2611_v14 = vld [vmem:[%s3450_s1 + $0x300] ss:$8 sps:$4 sm:$0xff]  }
  0x61   : > { %1508 = vmatprep.mubr.bf16.mxu0 %v2547_v10  ;;  %1682 = vmatprep.subr.bf16.mxu0 %v2546_v6  ;;  %v2589_v63 = vld [vmem:[#allocation2 + $0x154] ss:$28 sps:$4 sm:$0xff]   ;;  %v188_v0 = vld [vmem:[%s2877_s26 + $0x38] sm:$0xf]  ;;  %205 = vst [vmem:[#allocation2 + $0x1a4] sm:$0xf] %v189_v1 }
  0x62   : > { %1621 = vmatprep.mubr.bf16.mxu1 %v2549_v11  ;;  %1794 = vmatpush1.bf16.msra.mxu1 %v2569_v16  ;;  %204 = vst [vmem:[#allocation2 + $0x188] sm:$0xf] %v188_v0  ;;  %v2095_v2 = vld [vmem:[%s2877_s26 + $0x58] sm:$0xf]  ;;  %v470_v4 = vld [vmem:[#allocation2 + $0x150] sm:$0xff] }
  0x63   : > { %1795 = vmatprep.subr.bf16.mxu1 %v2585_v38  ;;  %v2096_v5 = vld [vmem:[%s2877_s26 + $0x5c] sm:$0xf]  ;;  %240 = vst [vmem:[#allocation2 + $0x18c] sm:$0xf] %v2095_v2  ;;  %v2113_v6 = vld [vmem:[%s2877_s26 + $0x78] sm:$0xf] }
  0x64   : > { %1683 = vmatpush1.bf16.msra.mxu0 %v2544_v13  ;;  %v2114_v7 = vld [vmem:[%s2877_s26 + $0x7c] sm:$0xf]  ;;  %v474_v8 = vld [vmem:[#allocation2 + $0x16c] sm:$0xff]  ;;  %241 = vst [vmem:[#allocation2 + $0x1a8] sm:$0xf] %v2096_v5 }
  0x65   : > { %1684 = vmatprep.subr.bf16.mxu0 %v2554_v18  ;;  %v2591_v9 = vld [vmem:[#allocation2 + $0x15c] ss:$28 sps:$4 sm:$0xff]   ;;  %276 = vst [vmem:[#allocation2 + $0x190] sm:$0xf] %v2113_v6  ;;  %277 = vst [vmem:[#allocation2 + $0x1ac] sm:$0xf] %v2114_v7  ;;  %v2229_v15 = vcombine.low %v470_v4, %v474_v8 }
  0x66   : > { %1796 = vmatpush1.bf16.msra.mxu1 %v2583_v37  ;;  %v2131_v10 = vld [vmem:[%s2877_s26 + $0x98] sm:$0xf]  ;;  %v2132_v11 = vld [vmem:[%s2877_s26 + $0x9c] sm:$0xf]  ;;  %v2613_v16 = vld [vmem:[%s3450_s1 + $0x304] ss:$8 sps:$4 sm:$0xff]  }
  0x67   : > { %1509 = vmatmul.mubr.bf16.gmra.mxu0 %v2208_v23  ;;  %1797 = vmatprep.subr.bf16.mxu1 %v2599_v58  ;;  %v2593_v12 = vld [vmem:[#allocation2 + $0x158] ss:$28 sps:$4 sm:$0xff]   ;;  %312 = vst [vmem:[#allocation2 + $0x194] sm:$0xf] %v2131_v10  ;;  %313 = vst [vmem:[#allocation2 + $0x1b0] sm:$0xf] %v2132_v11 }
  0x68   : > { %1622 = vmatmul.mubr.bf16.gmra.mxu1 %v2551_v19  ;;  %1685 = vmatpush1.bf16.msra.mxu0 %v2552_v20  ;;  %v2596_v13 = vld [vmem:[%s3450_s1 + $0x2b4] ss:$8 sps:$4 sm:$0xff]   ;;  %v2594_v17 = vld [vmem:[%s3450_s1 + $0x2b0] ss:$8 sps:$4 sm:$0xff]   ;;  %v2135_v18 = vld [vmem:[%s2877_s26 + $0x80] sm:$0xf] }
  0x69   : > { %1518 = vmatprep.mubr.bf16.mxu0 %v2561_v21  ;;  %1686 = vmatprep.subr.bf16.mxu0 %v2560_v29  ;;  %v2602_v19 = vld [vmem:[%s3450_s1 + $0x2a4] ss:$8 sps:$4 sm:$0xff]   ;;  %334 = vst [vmem:[#allocation2 + $0x10] sm:$0xf] %v2135_v18  ;;  %v2153_v21 = vld [vmem:[%s2877_s26 + $0xa0] sm:$0xf] }
  0x6a   : > { %1631 = vmatprep.mubr.bf16.mxu1 %v2563_v30  ;;  %1798 = vmatpush1.bf16.msra.mxu1 %v2597_v57  ;;  %v2136_v20 = vld [vmem:[%s2877_s26 + $0x84] sm:$0xf]  ;;  %v2600_v22 = vld [vmem:[%s3450_s1 + $0x2a0] ss:$8 sps:$4 sm:$0xff]   ;;  %370 = vst [vmem:[#allocation2 + $0x14] sm:$0xf] %v2153_v21 }
  0x6b   : > { %1799 = vmatprep.subr.bf16.mxu1 %v2613_v16  ;;  %v478_v23 = vld [vmem:[#allocation2 + $0x188] sm:$0xff]  ;;  %335 = vst [vmem:[#allocation2 + $0x2c] sm:$0xf] %v2136_v20  ;;  %v2610_v27 = vld [vmem:[%s3450_s1 + $0x294] ss:$8 sps:$4 sm:$0xff]  }
  0x6c   : > { %1687 = vmatpush1.bf16.msra.mxu0 %v2558_v31  ;;  %v482_v24 = vld [vmem:[#allocation2 + $0x1a4] sm:$0xff]  ;;  %371 = vst [vmem:[#allocation2 + $0x30] sm:$0xf] %v2154_v26  ;;  %v2171_v28 = vld [vmem:[%s2877_s26 + $0xc0] sm:$0xf] }
  0x6d   : > { %1688 = vmatprep.subr.bf16.mxu0 %v2568_v36  ;;  %v2603_v25 = vld [vmem:[#allocation2 + $0x18c] ss:$28 sps:$4 sm:$0xff]   ;;  %v2172_v29 = vld [vmem:[%s2877_s26 + $0xc4] sm:$0xf]  ;;  %406 = vst [vmem:[#allocation2 + $0x18] sm:$0xf] %v2171_v28 }
  0x6e   : > { %1800 = vmatpush1.bf16.msra.mxu1 %v2611_v14  ;;  %v2137_v30 = vld [vmem:[%s2877_s26 + $0x88] sm:$0xf]  ;;  %v2605_v31 = vld [vmem:[#allocation2 + $0x194] ss:$28 sps:$4 sm:$0xff]   ;;  %407 = vst [vmem:[#allocation2 + $0x34] sm:$0xf] %v2172_v29 }
  0x6f   : > { %1519 = vmatmul.mubr.bf16.gmra.mxu0 %v2215_v41  ;;  %336 = vst [vmem:[#allocation2 + $0x48] sm:$0xf] %v2137_v30  ;;  %v2607_v32 = vld [vmem:[#allocation2 + $0x190] ss:$28 sps:$4 sm:$0xff]   ;;  %v2155_v34 = vld [vmem:[%s2877_s26 + $0xa8] sm:$0xf] }
  0x70   : > { %1632 = vmatmul.mubr.bf16.gmra.mxu1 %v2565_v42  ;;  %1689 = vmatpush2.bf16.msra.mxu0 %v2566_v39  ;;  %v2138_v33 = vld [vmem:[%s2877_s26 + $0x8c] sm:$0xf]  ;;  %v2608_v35 = vld [vmem:[%s3450_s1 + $0x290] ss:$8 sps:$4 sm:$0xff]   ;;  %372 = vst [vmem:[#allocation2 + $0x4c] sm:$0xf] %v2155_v34  ;;  %v2236_v39 = vcombine.low %v478_v23, %v482_v24 }
  0x71   : > { %1528 = vmatprep.mubr.bf16.mxu0 %v2575_v46  ;;  %1690 = vmatprep.subr.bf16.mxu0 %v2574_v45  ;;  %337 = vst [vmem:[#allocation2 + $0x64] sm:$0xf] %v2138_v33  ;;  %v2156_v36 = vld [vmem:[%s2877_s26 + $0xac] sm:$0xf]  ;;  %v2173_v37 = vld [vmem:[%s2877_s26 + $0xc8] sm:$0xf] }
  0x72   : > { %1641 = vmatprep.mubr.bf16.mxu1 %v2577_v52  ;;  %v2174_v38 = vld [vmem:[%s2877_s26 + $0xcc] sm:$0xf]  ;;  %373 = vst [vmem:[#allocation2 + $0x68] sm:$0xf] %v2156_v36  ;;  %408 = vst [vmem:[#allocation2 + $0x50] sm:$0xf] %v2173_v37 }
  0x73   : > { %v2616_v40 = vld [vmem:[%s3450_s1 + $0x284] ss:$8 sps:$4 sm:$0xff]   ;;  %409 = vst [vmem:[#allocation2 + $0x6c] sm:$0xf] %v2174_v38  ;;  %v2139_v41 = vld [vmem:[%s2877_s26 + $0x90] sm:$0xf] }
  0x74   : > { %1691 = vmatpush2.bf16.msra.mxu0 %v2572_v51  ;;  %v2140_v42 = vld [vmem:[%s2877_s26 + $0x94] sm:$0xf]  ;;  %v2157_v43 = vld [vmem:[%s2877_s26 + $0xb0] sm:$0xf]  ;;  %338 = vst [vmem:[#allocation2 + $0x80] sm:$0xf] %v2139_v41 }
  0x75   : > { %1692 = vmatprep.subr.bf16.mxu0 %v2582_v53  ;;  %339 = vst [vmem:[#allocation2 + $0x9c] sm:$0xf] %v2140_v42  ;;  %v2158_v44 = vld [vmem:[%s2877_s26 + $0xb4] sm:$0xf]  ;;  %374 = vst [vmem:[#allocation2 + $0x84] sm:$0xf] %v2157_v43 }
  0x76   : > { %v2175_v45 = vld [vmem:[%s2877_s26 + $0xd0] sm:$0xf]  ;;  %v2176_v46 = vld [vmem:[%s2877_s26 + $0xd4] sm:$0xf]  ;;  %375 = vst [vmem:[#allocation2 + $0xa0] sm:$0xf] %v2158_v44 }
  0x77   : > { %1529 = vmatmul.mubr.bf16.gmra.mxu0 %v2222_v59  ;;  %410 = vst [vmem:[#allocation2 + $0x88] sm:$0xf] %v2175_v45  ;;  %411 = vst [vmem:[#allocation2 + $0xa4] sm:$0xf] %v2176_v46  ;;  %v2141_v47 = vld [vmem:[%s2877_s26 + $0x98] sm:$0xf] }
  0x78   : > { %1642 = vmatmul.mubr.bf16.gmra.mxu1 %v2579_v60  ;;  %1693 = vmatpush2.bf16.msra.mxu0 %v2580_v61  ;;  %v2142_v48 = vld [vmem:[%s2877_s26 + $0x9c] sm:$0xf]  ;;  %v2619_v49 = vld [vmem:[#allocation2 + $0x14] ss:$28 sps:$4 sm:$0xff]   ;;  %340 = vst [vmem:[#allocation2 + $0xb8] sm:$0xf] %v2141_v47 }
  0x79   : > { %1538 = vmatprep.mubr.bf16.mxu0 %v2589_v63  ;;  %1694 = vmatprep.subr.bf16.mxu0 %v2588_v62  ;;  %341 = vst [vmem:[#allocation2 + $0xd4] sm:$0xf] %v2142_v48  ;;  %v2614_v50 = vld [vmem:[%s3450_s1 + $0x280] ss:$8 sps:$4 sm:$0xff]   ;;  %v2159_v51 = vld [vmem:[%s2877_s26 + $0xb8] sm:$0xf] }
  0x7a   : > { %1651 = vmatprep.mubr.bf16.mxu1 %v2591_v9  ;;  %v2160_v52 = vld [vmem:[%s2877_s26 + $0xbc] sm:$0xf]  ;;  %v2177_v53 = vld [vmem:[%s2877_s26 + $0xd8] sm:$0xf]  ;;  %376 = vst [vmem:[#allocation2 + $0xbc] sm:$0xf] %v2159_v51 }
  0x7b   : > { %377 = vst [vmem:[#allocation2 + $0xd8] sm:$0xf] %v2160_v52  ;;  %v2178_v55 = vld [vmem:[%s2877_s26 + $0xdc] sm:$0xf]  ;;  %412 = vst [vmem:[#allocation2 + $0xc0] sm:$0xf] %v2177_v53 }
  0x7c   : > { %1695 = vmatpush2.bf16.msra.mxu0 %v2586_v3  ;;  %v2143_v56 = vld [vmem:[%s2877_s26 + $0xa0] sm:$0xf]  ;;  %v2617_v57 = vld [vmem:[#allocation2 + $0x10] ss:$28 sps:$4 sm:$0xff]   ;;  %413 = vst [vmem:[#allocation2 + $0xdc] sm:$0xf] %v2178_v55 }
  0x7d   : > { %1696 = vmatprep.subr.bf16.mxu0 %v2596_v13  ;;  %342 = vst [vmem:[#allocation2 + $0xf0] sm:$0xf] %v2143_v56  ;;  %v2620_v58 = vld [vmem:[#allocation2 + $0x18] ss:$28 sps:$4 sm:$0xff]   ;;  %v2621_v59 = vld [vmem:[#allocation2 + $0x4c] ss:$28 sps:$4 sm:$0xff]  }
  0x7e   : > { %v2144_v60 = vld [vmem:[%s2877_s26 + $0xa4] sm:$0xf]  ;;  %v2161_v61 = vld [vmem:[%s2877_s26 + $0xc0] sm:$0xf]  ;;  %v2624_v2 = vld [vmem:[#allocation2 + $0x50] ss:$28 sps:$4 sm:$0xff]  }
  0x7f   : > { %1539 = vmatmul.mubr.bf16.gmra.mxu0 %v2229_v15  ;;  %343 = vst [vmem:[#allocation2 + $0x10c] sm:$0xf] %v2144_v60  ;;  %v2162_v62 = vld [vmem:[%s2877_s26 + $0xc4] sm:$0xf]  ;;  %378 = vst [vmem:[#allocation2 + $0xf4] sm:$0xf] %v2161_v61 }
  0x80   : > { %1652 = vmatmul.mubr.bf16.gmra.mxu1 %v2593_v12  ;;  %1697 = vmatpush2.bf16.msra.mxu0 %v2594_v17  ;;  %v2179_v63 = vld [vmem:[%s2877_s26 + $0xe0] sm:$0xf]  ;;  %v2180_v0 = vld [vmem:[%s2877_s26 + $0xe4] sm:$0xf]  ;;  %379 = vst [vmem:[#allocation2 + $0x110] sm:$0xf] %v2162_v62 }
  0x81   : > { %1548 = vmatprep.mubr.bf16.mxu0 %v2603_v25  ;;  %1698 = vmatprep.subr.bf16.mxu0 %v2602_v19  ;;  %414 = vst [vmem:[#allocation2 + $0xf8] sm:$0xf] %v2179_v63  ;;  %415 = vst [vmem:[#allocation2 + $0x114] sm:$0xf] %v2180_v0  ;;  %v2623_v1 = vld [vmem:[#allocation2 + $0x48] ss:$28 sps:$4 sm:$0xff]  }
  0x82   : > { %1661 = vmatprep.mubr.bf16.mxu1 %v2605_v31  ;;  %v2625_v3 = vld [vmem:[#allocation2 + $0x84] ss:$28 sps:$4 sm:$0xff]   ;;  %v2145_v4 = vld [vmem:[%s2877_s26 + $0xa8] sm:$0xf]  ;;  %v2146_v5 = vld [vmem:[%s2877_s26 + $0xac] sm:$0xf] }
  0x83   : > { %344 = vst [vmem:[#allocation2 + $0x128] sm:$0xf] %v2145_v4  ;;  %345 = vst [vmem:[#allocation2 + $0x144] sm:$0xf] %v2146_v5  ;;  %v2163_v6 = vld [vmem:[%s2877_s26 + $0xc8] sm:$0xf] }
  0x84   : > { %1699 = vmatpush2.bf16.msra.mxu0 %v2600_v22  ;;  %v2164_v7 = vld [vmem:[%s2877_s26 + $0xcc] sm:$0xf]  ;;  %v2181_v8 = vld [vmem:[%s2877_s26 + $0xe8] sm:$0xf]  ;;  %380 = vst [vmem:[#allocation2 + $0x12c] sm:$0xf] %v2163_v6 }
  0x85   : > { %1700 = vmatprep.subr.bf16.mxu0 %v2610_v27  ;;  %381 = vst [vmem:[#allocation2 + $0x148] sm:$0xf] %v2164_v7  ;;  %v2182_v9 = vld [vmem:[%s2877_s26 + $0xec] sm:$0xf]  ;;  %416 = vst [vmem:[#allocation2 + $0x130] sm:$0xf] %v2181_v8 }
  0x86   : > { %v2147_v10 = vld [vmem:[%s2877_s26 + $0xb0] sm:$0xf]  ;;  %v2148_v11 = vld [vmem:[%s2877_s26 + $0xb4] sm:$0xf]  ;;  %417 = vst [vmem:[#allocation2 + $0x14c] sm:$0xf] %v2182_v9 }
  0x87   : > { %1549 = vmatmul.mubr.bf16.gmra.mxu0 %v2236_v39  ;;  %346 = vst [vmem:[#allocation2 + $0x160] sm:$0xf] %v2147_v10  ;;  %347 = vst [vmem:[#allocation2 + $0x17c] sm:$0xf] %v2148_v11  ;;  %v2165_v12 = vld [vmem:[%s2877_s26 + $0xd0] sm:$0xf] }
  0x88   : > { %1662 = vmatmul.mubr.bf16.gmra.mxu1 %v2607_v32  ;;  %1701 = vmatpush2.bf16.msra.mxu0 %v2608_v35  ;;  %v2166_v13 = vld [vmem:[%s2877_s26 + $0xd4] sm:$0xf]  ;;  %v2183_v14 = vld [vmem:[%s2877_s26 + $0xf0] sm:$0xf]  ;;  %382 = vst [vmem:[#allocation2 + $0x164] sm:$0xf] %v2165_v12 }
  0x89   : > { %1704 = vmatprep.mubr.bf16.mxu0 %v2619_v49  ;;  %1702 = vmatprep.subr.bf16.mxu0 %v2616_v40  ;;  %383 = vst [vmem:[#allocation2 + $0x180] sm:$0xf] %v2166_v13  ;;  %v2184_v15 = vld [vmem:[%s2877_s26 + $0xf4] sm:$0xf]  ;;  %418 = vst [vmem:[#allocation2 + $0x168] sm:$0xf] %v2183_v14 }
  0x8a   : > { %1817 = vmatprep.mubr.bf16.mxu1 %v2689_v54  ;;  %v2149_v16 = vld [vmem:[%s2877_s26 + $0xb8] sm:$0xf]  ;;  %419 = vst [vmem:[#allocation2 + $0x184] sm:$0xf] %v2184_v15  ;;  %v2150_v17 = vld [vmem:[%s2877_s26 + $0xbc] sm:$0xf] }
  0x8b   : > { %348 = vst [vmem:[#allocation2 + $0x198] sm:$0xf] %v2149_v16  ;;  %v2167_v18 = vld [vmem:[%s2877_s26 + $0xd8] sm:$0xf]  ;;  %v2168_v19 = vld [vmem:[%s2877_s26 + $0xdc] sm:$0xf] }
  0x8c   : > { %1703 = vmatpush2.bf16.msra.mxu0 %v2614_v50  ;;  %v2627_v20 = vld [vmem:[#allocation2 + $0x80] ss:$28 sps:$4 sm:$0xff]   ;;  %349 = vst [vmem:[#allocation2 + $0x1b4] sm:$0xf] %v2150_v17  ;;  %384 = vst [vmem:[#allocation2 + $0x19c] sm:$0xf] %v2167_v18 }
  0x8d   : > { %385 = vst [vmem:[#allocation2 + $0x1b8] sm:$0xf] %v2168_v19  ;;  %v2185_v21 = vld [vmem:[%s2877_s26 + $0xf8] sm:$0xf]  ;;  %v2186_v22 = vld [vmem:[%s2877_s26 + $0xfc] sm:$0xf] }
  0x8e   : > { %v2628_v23 = vld [vmem:[#allocation2 + $0x88] ss:$28 sps:$4 sm:$0xff]   ;;  %420 = vst [vmem:[#allocation2 + $0x1a0] sm:$0xf] %v2185_v21  ;;  %421 = vst [vmem:[#allocation2 + $0x1bc] sm:$0xf] %v2186_v22 }
  0x8f   : > { %1705 = vmatmul.mubr.bf16.vlgmr.msra.gmra.mxu0 %v2617_v57  ;;  %v2629_v24 = vld [vmem:[#allocation2 + $0xbc] ss:$28 sps:$4 sm:$0xff]   ;;  %v2633_v27 = vld [vmem:[#allocation2 + $0xf4] ss:$28 sps:$4 sm:$0xff]   ;;  %v2637_v30 = vld [vmem:[#allocation2 + $0x12c] ss:$28 sps:$4 sm:$0xff]  }
  0x90   : > { %1818 = vmatmul.mubr.bf16.vlgmr.msra.gmra.mxu1 %v2620_v58  ;;  %1714 = vmatprep.mubr.bf16.mxu0 %v2621_v59  ;;  %v2631_v25 = vld [vmem:[#allocation2 + $0xb8] ss:$28 sps:$4 sm:$0xff]   ;;  %v2632_v26 = vld [vmem:[#allocation2 + $0xc0] ss:$28 sps:$4 sm:$0xff]   ;;  %v2635_v28 = vld [vmem:[#allocation2 + $0xf0] ss:$28 sps:$4 sm:$0xff]  }
  0x91   : > { %1827 = vmatprep.mubr.bf16.mxu1 %v2689_v54  ;;  %v2636_v29 = vld [vmem:[#allocation2 + $0xf8] ss:$28 sps:$4 sm:$0xff]   ;;  %v2639_v31 = vld [vmem:[#allocation2 + $0x128] ss:$28 sps:$4 sm:$0xff]   ;;  %v2640_v32 = vld [vmem:[#allocation2 + $0x130] ss:$28 sps:$4 sm:$0xff]  }
  0x92   : > { %v2641_v33 = vld [vmem:[#allocation2 + $0x164] ss:$28 sps:$4 sm:$0xff]   ;;  %s2072_s26 = sshll.u32 %s2675_s10, 1 }
  0x93   : > { %v2643_v34 = vld [vmem:[#allocation2 + $0x160] ss:$28 sps:$4 sm:$0xff]   ;;  %v2644_v35 = vld [vmem:[#allocation2 + $0x168] ss:$28 sps:$4 sm:$0xff]   ;;  %v2647_v37 = vld [vmem:[#allocation2 + $0x198] ss:$28 sps:$4 sm:$0xff]   ;;  %s159_s22 = sadd.s32 %s2671_s9, %s2072_s26 }
  0x94   : > { %v2645_v36 = vld [vmem:[#allocation2 + $0x19c] ss:$28 sps:$4 sm:$0xff]   ;;  %s2073_s23 = sshll.u32 %s159_s22, 4 }
  0x95   : > { %v2648_v38 = vld [vmem:[#allocation2 + $0x1a0] ss:$28 sps:$4 sm:$0xff]   ;;  %p161_p6 = scmp.lt.s32.totalorder %s2073_s23, 63 }
  0x97   : > { %1715 = vmatmul.mubr.bf16.gmra.mxu0 %v2623_v1  ;;  %s3489_s23 = smov (!%p161_p6, %s2073_s23), 63 }
  0x98   : > { %1828 = vmatmul.mubr.bf16.gmra.mxu1 %v2624_v2  ;;  %1724 = vmatprep.mubr.bf16.mxu0 %v2625_v3  ;;  %s2357_s9 = sshll.u32 %s3489_s23, 4 }
  0x99   : > { %1837 = vmatprep.mubr.bf16.mxu1 %v2689_v54  ;;  %s3342_s25 = scalar_lea.vmem %s3451_s2, %s2357_s9 }
  0x9f   : > { %1725 = vmatmul.mubr.bf16.gmra.mxu0 %v2627_v20 }
  0xa0   : > { %1838 = vmatmul.mubr.bf16.gmra.mxu1 %v2628_v23  ;;  %1734 = vmatprep.mubr.bf16.mxu0 %v2629_v24 }
  0xa1   : > { %1847 = vmatprep.mubr.bf16.mxu1 %v2689_v54 }
  0xa7   : > { %1735 = vmatmul.mubr.bf16.gmra.mxu0 %v2631_v25 }
  0xa8   : > { %1848 = vmatmul.mubr.bf16.gmra.mxu1 %v2632_v26  ;;  %1744 = vmatprep.mubr.bf16.mxu0 %v2633_v27 }
  0xa9   : > { %1857 = vmatprep.mubr.bf16.mxu1 %v2689_v54 }
  0xaf   : > { %1745 = vmatmul.mubr.bf16.gmra.mxu0 %v2635_v28 }
  0xb0   : > { %1858 = vmatmul.mubr.bf16.gmra.mxu1 %v2636_v29  ;;  %1754 = vmatprep.mubr.bf16.mxu0 %v2637_v30 }
  0xb1   : > { %1867 = vmatprep.mubr.bf16.mxu1 %v2689_v54 }
  0xb7   : > { %1755 = vmatmul.mubr.bf16.gmra.mxu0 %v2639_v31 }
  0xb8   : > { %1868 = vmatmul.mubr.bf16.gmra.mxu1 %v2640_v32  ;;  %1764 = vmatprep.mubr.bf16.mxu0 %v2641_v33 }
  0xb9   : > { %1877 = vmatprep.mubr.bf16.mxu1 %v2689_v54 }
  0xbf   : > { %1765 = vmatmul.mubr.bf16.gmra.mxu0 %v2643_v34 }
  0xc0   : > { %1878 = vmatmul.mubr.bf16.gmra.mxu1 %v2644_v35  ;;  %1774 = vmatprep.mubr.bf16.mxu0 %v2645_v36 }
  0xc1   : > { %1887 = vmatprep.mubr.bf16.mxu1 %v2689_v54 }
  0xc7   : > { %1775 = vmatmul.mubr.bf16.gmra.mxu0 %v2647_v37 }
  0xc8   : > { %1888 = vmatmul.mubr.bf16.gmra.mxu1 %v2648_v38 }
 0x10f   : > { %v3203_v39 = vpop.f32.mrf.mxu0 }
 0x110   : > { %v3205_v40 = vpop.f32.mrf.mxu1 }
 0x111   : > { %v3207_v41 = vpop.f32.mrf.mxu0 }
 0x112   : > { %v3209_v42 = vpop.f32.mrf.mxu1 }
 0x113   : > { %v3211_v43 = vpop.f32.mrf.mxu0 }
 0x114   : > { %v3213_v44 = vpop.f32.mrf.mxu1 }
 0x115   : > { %v3215_v45 = vpop.f32.mrf.mxu0 }
 0x116   : > { %v3217_v46 = vpop.f32.mrf.mxu1 }
 0x117   : > { %v3219_v47 = vpop.f32.mrf.mxu0 }
 0x118   : > { %v3221_v48 = vpop.f32.mrf.mxu1 }
 0x119   : > { %v3223_v49 = vpop.f32.mrf.mxu0 }
 0x11a   : > { %v3225_v50 = vpop.f32.mrf.mxu1 }
 0x11b   : > { %v3227_v51 = vpop.f32.mrf.mxu0 }
 0x11c   : > { %v3229_v52 = vpop.f32.mrf.mxu1 }
 0x11d   : > { %v3231_v53 = vpop.f32.mrf.mxu0 }
 0x11e   : > { %v3233_v54 = vpop.f32.mrf.mxu1 }
 0x11f   : > { %v3235_v55 = vpop.f32.mrf.mxu0 }
 0x120   : > { %v3237_v56 = vpop.f32.mrf.mxu1 }
 0x121   : > { %v3239_v57 = vpop.f32.mrf.mxu0 }
 0x122   : > { %v3241_v58 = vpop.f32.mrf.mxu1 }
 0x123   : > { %v3243_v59 = vpop.f32.mrf.mxu0 }
 0x124   : > { %v3245_v60 = vpop.f32.mrf.mxu1 }
 0x125   : > { %v3247_v61 = vpop.f32.mrf.mxu0 }
 0x126   : > { %v3249_v62 = vpop.f32.mrf.mxu1 }
 0x127   : > { %v3251_v63 = vpop.f32.mrf.mxu0 }
 0x128   : > { %v3253_v0 = vpop.f32.mrf.mxu1 }
 0x129   : > { %v3255_v1 = vpop.f32.mrf.mxu0 }
 0x12a   : > { %v3257_v2 = vpop.f32.mrf.mxu1 }
 0x12b   : > { %v3259_v3 = vpop.f32.mrf.mxu0 }
 0x12c   : > { %v3261_v4 = vpop.f32.mrf.mxu1 }
 0x12d   : > { %v3263_v5 = vpop.f32.mrf.mxu0 }
 0x12e   : > { %v3265_v6 = vpop.f32.mrf.mxu1 }
 0x12f   : > { %v3267_v7 = vpop.f32.mrf.mxu0 }
 0x130   : > { %v3269_v8 = vpop.f32.mrf.mxu1 }
 0x131   : > { %v3271_v9 = vpop.f32.mrf.mxu0 }
 0x132   : > { %v3273_v10 = vpop.f32.mrf.mxu1 }
 0x133   : > { %v3275_v11 = vpop.f32.mrf.mxu0 }
 0x134   : > { %v3277_v12 = vpop.f32.mrf.mxu1 }
 0x135   : > { %v3279_v13 = vpop.f32.mrf.mxu0 }
 0x136   : > { %v3281_v14 = vpop.f32.mrf.mxu1 }
 0x137   : > { %v3283_v15 = vpop.f32.mrf.mxu0 }
 0x138   : > { %v3285_v16 = vpop.f32.mrf.mxu1 }
 0x139   : > { %v3287_v17 = vpop.f32.mrf.mxu0 }
 0x13a   : > { %v3289_v18 = vpop.f32.mrf.mxu1 }
 0x13b   : > { %v3291_v19 = vpop.f32.mrf.mxu0 }
 0x13c   : > { %v3293_v20 = vpop.f32.mrf.mxu1 }
 0x13d   : > { %v3295_v21 = vpop.f32.mrf.mxu0 }
 0x13e   : > { %v3297_v22 = vpop.f32.mrf.mxu1 }
 0x13f   : > { %v3299_v23 = vpop.f32.mrf.mxu0 }
 0x140   : > { %v3301_v24 = vpop.f32.mrf.mxu1 }
 0x141   : > { %v3304_v25 = vpop.f32.mrf.mxu0 }
 0x142   : > { %v3306_v26 = vpop.f32.mrf.mxu1 }
 0x143   : > { %3452 = vst [vmem:[#allocation3_spill] sm:$0xff] %v3306_v26  ;;  %v3309_v27 = vpop.f32.mrf.mxu0  ;;  %v1606_v26 = vadd.f32 %v3225_v50, %v3223_v49  ;;  %v1610_v49 = vadd.f32 %v3233_v54, %v3231_v53  ;;  %v1616_v53 = vadd.f32 %v3241_v58, %v3239_v57  ;;  %v1620_v57 = vadd.f32 %v3249_v62, %v3247_v61 }
 0x144   : > { %3453 = vst [vmem:[#allocation4_spill] sm:$0xff] %v3309_v27  ;;  %v3311_v28 = vpop.f32.mrf.mxu1  ;;  %v1626_v61 = vadd.f32 %v3257_v2, %v3255_v1  ;;  %v1630_v1 = vadd.f32 %v3265_v6, %v3263_v5  ;;  %v1636_v5 = vadd.f32 %v3273_v10, %v3271_v9  ;;  %v1640_v9 = vadd.f32 %v3281_v14, %v3279_v13 }
 0x145   : > { %3454 = vst [vmem:[#allocation5_spill] sm:$0xff] %v3311_v28  ;;  %v3313_v29 = vpop.f32.mrf.mxu0  ;;  %v1646_v13 = vadd.f32 %v3289_v18, %v3287_v17  ;;  %v1650_v17 = vadd.f32 %v3297_v22, %v3295_v21 }
 0x146   : > { %3455 = vst [vmem:[#allocation6_spill] sm:$0xff] %v3313_v29  ;;  %v3315_v30 = vpop.f32.mrf.mxu1 }
 0x147   : > { %3456 = vst [vmem:[#allocation7_spill] sm:$0xff] %v3315_v30  ;;  %v3317_v31 = vpop.f32.mrf.mxu0  ;;  %v1594_v30 = vadd.f32 %v3205_v40, %v3203_v39 }
 0x148   : > { %3457 = vst [vmem:[#allocation8_spill] sm:$0xff] %v3317_v31  ;;  %v3319_v32 = vpop.f32.mrf.mxu1 }
 0x149   : > { %3458 = vst [vmem:[#allocation9_spill] sm:$0xff] %v3319_v32  ;;  %v3321_v33 = vpop.f32.mrf.mxu0  ;;  %v1596_v32 = vadd.f32 %v3209_v42, %v3207_v41  ;;  %v1600_v41 = vadd.f32 %v3217_v46, %v3215_v45 }
 0x14a   : > { %3459 = vst [vmem:[#allocation10_spill] sm:$0xff] %v3321_v33  ;;  %v3323_v34 = vpop.f32.mrf.mxu1 }
 0x14b   : > { %3460 = vst [vmem:[#allocation11_spill] sm:$0xff] %v3323_v34  ;;  %v3325_v35 = vpop.f32.mrf.mxu0 }
 0x14c   : > { %3461 = vst [vmem:[#allocation12_spill] sm:$0xff] %v3325_v35  ;;  %v3327_v36 = vpop.f32.mrf.mxu1 }
 0x14d   : > { %3462 = vst [vmem:[#allocation13_spill] sm:$0xff] %v3327_v36  ;;  %v3329_v37 = vpop.f32.mrf.mxu0  ;;  %v1598_v36 = vadd.f32 %v3213_v44, %v3211_v43  ;;  %v1604_v43 = vadd.f32 %v3221_v48, %v3219_v47  ;;  %v1608_v47 = vadd.f32 %v3229_v52, %v3227_v51  ;;  %v1614_v51 = vadd.f32 %v3237_v56, %v3235_v55 }
 0x14e   : > { %3463 = vst [vmem:[#allocation14_spill] sm:$0xff] %v3329_v37  ;;  %v3331_v38 = vpop.f32.mrf.mxu1  ;;  %v1618_v55 = vadd.f32 %v3245_v60, %v3243_v59  ;;  %v1624_v59 = vadd.f32 %v3253_v0, %v3251_v63  ;;  %v1628_v63 = vadd.f32 %v3261_v4, %v3259_v3  ;;  %v1634_v3 = vadd.f32 %v3269_v8, %v3267_v7 }
 0x14f   : > { %3464 = vst [vmem:[#allocation15_spill] sm:$0xff] %v3331_v38  ;;  %v1706_v31 = vpop.f32.mrf.mxu0  ;;  %v1638_v7 = vadd.f32 %v3277_v12, %v3275_v11  ;;  %v1644_v11 = vadd.f32 %v3285_v16, %v3283_v15  ;;  %v1648_v15 = vadd.f32 %v3293_v20, %v3291_v19  ;;  %v1654_v19 = vadd.f32 %v3301_v24, %v3299_v23 }
 0x150   : > { %v1819_v29 = vpop.f32.mrf.mxu1  ;;  %v1707_v33 = vadd.f32 %v1706_v31, %v1594_v30 }
 0x151   : > { %v1708_v34 = vpop.f32.mrf.mxu0 }
 0x152   : > { %v1821_v28 = vpop.f32.mrf.mxu1  ;;  %v1820_v35 = vadd.f32 %v1819_v29, %v1707_v33  ;;  %v1709_v27 = vadd.f32 %v1708_v34, %v1596_v32 }
 0x153   : > { %v1710_v39 = vpop.f32.mrf.mxu0 }
 0x154   : > { %v1823_v40 = vpop.f32.mrf.mxu1  ;;  %v1898_v42 = vmax.f32 %v1820_v35, 0.0  ;;  %v1822_v30 = vadd.f32 %v1821_v28, %v1709_v27  ;;  %v1711_v31 = vadd.f32 %v1710_v39, %v1598_v36 }
 0x155   : > { %v1712_v38 = vpop.f32.mrf.mxu0 }
 0x156   : > { %v1825_v37 = vpop.f32.mrf.mxu1  ;;  %1930 = vst [vmem:[%s3342_s25] sm:$0xff] %v1898_v42  ;;  %v1899_v44 = vmax.f32 %v1822_v30, 0.0  ;;  %v1824_v29 = vadd.f32 %v1823_v40, %v1711_v31  ;;  %v1713_v32 = vadd.f32 %v1712_v38, %v1600_v41 }
 0x157   : > { %v1716_v33 = vpop.f32.mrf.mxu0 }
 0x158   : > { %v1829_v34 = vpop.f32.mrf.mxu1  ;;  %1931 = vst [vmem:[%s3342_s25 + $0x8] sm:$0xff] %v1899_v44  ;;  %v1900_v45 = vmax.f32 %v1824_v29, 0.0  ;;  %v1826_v46 = vadd.f32 %v1825_v37, %v1713_v32  ;;  %v1717_v27 = vadd.f32 %v1716_v33, %v1604_v43 }
 0x159   : > { %v1718_v28 = vpop.f32.mrf.mxu0 }
 0x15a   : > { %v1831_v35 = vpop.f32.mrf.mxu1  ;;  %1932 = vst [vmem:[%s3342_s25 + $0x10] sm:$0xff] %v1900_v45  ;;  %v1901_v48 = vmax.f32 %v1826_v46, 0.0  ;;  %v1830_v36 = vadd.f32 %v1829_v34, %v1717_v27  ;;  %v1719_v38 = vadd.f32 %v1718_v28, %v1606_v26 }
 0x15b   : > { %v1720_v39 = vpop.f32.mrf.mxu0 }
 0x15c   : > { %v1833_v40 = vpop.f32.mrf.mxu1  ;;  %1933 = vst [vmem:[%s3342_s25 + $0x18] sm:$0xff] %v1901_v48  ;;  %v1902_v50 = vmax.f32 %v1830_v36, 0.0  ;;  %v1832_v37 = vadd.f32 %v1831_v35, %v1719_v38  ;;  %v1721_v41 = vadd.f32 %v1720_v39, %v1608_v47 }
 0x15d   : > { %v1722_v42 = vpop.f32.mrf.mxu0 }
 0x15e   : > { %v1835_v30 = vpop.f32.mrf.mxu1  ;;  %1934 = vst [vmem:[%s3342_s25 + $0x20] sm:$0xff] %v1902_v50  ;;  %v1903_v52 = vmax.f32 %v1832_v37, 0.0  ;;  %v1834_v31 = vadd.f32 %v1833_v40, %v1721_v41  ;;  %v1723_v26 = vadd.f32 %v1722_v42, %v1610_v49 }
 0x15f   : > { %v1726_v43 = vpop.f32.mrf.mxu0 }
 0x160   : > { %v1839_v44 = vpop.f32.mrf.mxu1  ;;  %1935 = vst [vmem:[%s3342_s25 + $0x28] sm:$0xff] %v1903_v52  ;;  %v1904_v54 = vmax.f32 %v1834_v31, 0.0  ;;  %v1836_v29 = vadd.f32 %v1835_v30, %v1723_v26  ;;  %v1727_v32 = vadd.f32 %v1726_v43, %v1614_v51 }
 0x161   : > { %v1728_v33 = vpop.f32.mrf.mxu0 }
 0x162   : > { %v1841_v34 = vpop.f32.mrf.mxu1  ;;  %1936 = vst [vmem:[%s3342_s25 + $0x30] sm:$0xff] %v1904_v54  ;;  %v1905_v56 = vmax.f32 %v1836_v29, 0.0  ;;  %v1840_v45 = vadd.f32 %v1839_v44, %v1727_v32  ;;  %v1729_v46 = vadd.f32 %v1728_v33, %v1616_v53 }
 0x163   : > { %v1730_v27 = vpop.f32.mrf.mxu0 }
 0x164   : > { %v1843_v28 = vpop.f32.mrf.mxu1  ;;  %1937 = vst [vmem:[%s3342_s25 + $0x38] sm:$0xff] %v1905_v56  ;;  %v1906_v58 = vmax.f32 %v1840_v45, 0.0  ;;  %v1842_v35 = vadd.f32 %v1841_v34, %v1729_v46  ;;  %v1731_v47 = vadd.f32 %v1730_v27, %v1618_v55 }
 0x165   : > { %v1732_v48 = vpop.f32.mrf.mxu0 }
 0x166   : > { %v1845_v36 = vpop.f32.mrf.mxu1  ;;  %1938 = vst [vmem:[%s3342_s25 + $0x40] sm:$0xff] %v1906_v58  ;;  %v1907_v60 = vmax.f32 %v1842_v35, 0.0  ;;  %v1844_v38 = vadd.f32 %v1843_v28, %v1731_v47  ;;  %v1733_v39 = vadd.f32 %v1732_v48, %v1620_v57 }
 0x167   : > { %v1736_v40 = vpop.f32.mrf.mxu0 }
 0x168   : > { %v1849_v49 = vpop.f32.mrf.mxu1  ;;  %1939 = vst [vmem:[%s3342_s25 + $0x48] sm:$0xff] %v1907_v60  ;;  %v1908_v62 = vmax.f32 %v1844_v38, 0.0  ;;  %v1846_v50 = vadd.f32 %v1845_v36, %v1733_v39  ;;  %v1737_v37 = vadd.f32 %v1736_v40, %v1624_v59 }
 0x169   : > { %v1738_v41 = vpop.f32.mrf.mxu0 }
 0x16a   : > { %v1851_v42 = vpop.f32.mrf.mxu1  ;;  %1940 = vst [vmem:[%s3342_s25 + $0x50] sm:$0xff] %v1908_v62  ;;  %v1909_v0 = vmax.f32 %v1846_v50, 0.0  ;;  %v1850_v30 = vadd.f32 %v1849_v49, %v1737_v37  ;;  %v1739_v51 = vadd.f32 %v1738_v41, %v1626_v61 }
 0x16b   : > { %v1740_v52 = vpop.f32.mrf.mxu0 }
 0x16c   : > { %v1853_v31 = vpop.f32.mrf.mxu1  ;;  %1941 = vst [vmem:[%s3342_s25 + $0x58] sm:$0xff] %v1909_v0  ;;  %v1910_v2 = vmax.f32 %v1850_v30, 0.0  ;;  %v1852_v26 = vadd.f32 %v1851_v42, %v1739_v51  ;;  %v1741_v43 = vadd.f32 %v1740_v52, %v1628_v63 }
 0x16d   : > { %v1742_v44 = vpop.f32.mrf.mxu0 }
 0x16e   : > { %v1855_v53 = vpop.f32.mrf.mxu1  ;;  %1942 = vst [vmem:[%s3342_s25 + $0x60] sm:$0xff] %v1910_v2  ;;  %v1911_v4 = vmax.f32 %v1852_v26, 0.0  ;;  %v1854_v54 = vadd.f32 %v1853_v31, %v1741_v43  ;;  %v1743_v29 = vadd.f32 %v1742_v44, %v1630_v1  ;;  %v3465_v2 = vld [vmem:[#allocation3_spill] sm:$0xff] }
 0x16f   : > { %v1746_v32 = vpop.f32.mrf.mxu0  ;;  %v1656_v21 = vadd.f32 %v3465_v2, %v3304_v25 }
 0x170   : > { %v1859_v33 = vpop.f32.mrf.mxu1  ;;  %1943 = vst [vmem:[%s3342_s25 + $0x68] sm:$0xff] %v1911_v4  ;;  %v1912_v6 = vmax.f32 %v1854_v54, 0.0  ;;  %v1856_v34 = vadd.f32 %v1855_v53, %v1743_v29  ;;  %v1747_v55 = vadd.f32 %v1746_v32, %v1634_v3  ;;  %v3466_v3 = vld [vmem:[#allocation4_spill] sm:$0xff]  ;;  %v3467_v4 = vld [vmem:[#allocation5_spill] sm:$0xff] }
 0x171   : > { %v1748_v56 = vpop.f32.mrf.mxu0  ;;  %v1658_v23 = vadd.f32 %v3467_v4, %v3466_v3 }
 0x172   : > { %v1861_v45 = vpop.f32.mrf.mxu1  ;;  %1944 = vst [vmem:[%s3342_s25 + $0x70] sm:$0xff] %v1912_v6  ;;  %v1913_v8 = vmax.f32 %v1856_v34, 0.0  ;;  %v1860_v46 = vadd.f32 %v1859_v33, %v1747_v55  ;;  %v1749_v27 = vadd.f32 %v1748_v56, %v1636_v5  ;;  %v3468_v5 = vld [vmem:[#allocation6_spill] sm:$0xff]  ;;  %v3469_v6 = vld [vmem:[#allocation7_spill] sm:$0xff] }
 0x173   : > { %v1750_v28 = vpop.f32.mrf.mxu0  ;;  %v1660_v25 = vadd.f32 %v3469_v6, %v3468_v5 }
 0x174   : > { %v1863_v57 = vpop.f32.mrf.mxu1  ;;  %1945 = vst [vmem:[%s3342_s25 + $0x78] sm:$0xff] %v1913_v8  ;;  %v1914_v10 = vmax.f32 %v1860_v46, 0.0  ;;  %v1862_v58 = vadd.f32 %v1861_v45, %v1749_v27  ;;  %v1751_v35 = vadd.f32 %v1750_v28, %v1638_v7  ;;  %v3470_v8 = vld [vmem:[#allocation8_spill] sm:$0xff]  ;;  %v3471_v46 = vld [vmem:[#allocation9_spill] sm:$0xff] }
 0x175   : > { %v1752_v47 = vpop.f32.mrf.mxu0  ;;  %v1664_v27 = vadd.f32 %v3471_v46, %v3470_v8 }
 0x176   : > { %v1865_v48 = vpop.f32.mrf.mxu1  ;;  %1946 = vst [vmem:[%s3342_s25 + $0x80] sm:$0xff] %v1914_v10  ;;  %v1915_v12 = vmax.f32 %v1862_v58, 0.0  ;;  %v1864_v36 = vadd.f32 %v1863_v57, %v1751_v35  ;;  %v1753_v59 = vadd.f32 %v1752_v47, %v1640_v9  ;;  %v3472_v35 = vld [vmem:[#allocation10_spill] sm:$0xff]  ;;  %v3473_v47 = vld [vmem:[#allocation11_spill] sm:$0xff] }
 0x177   : > { %v1756_v60 = vpop.f32.mrf.mxu0 }
 0x178   : > { %v1869_v38 = vpop.f32.mrf.mxu1  ;;  %1947 = vst [vmem:[%s3342_s25 + $0x88] sm:$0xff] %v1915_v12  ;;  %v1916_v14 = vmax.f32 %v1864_v36, 0.0  ;;  %v1866_v39 = vadd.f32 %v1865_v48, %v1753_v59  ;;  %v1757_v40 = vadd.f32 %v1756_v60, %v1644_v11  ;;  %v1666_v48 = vadd.f32 %v3473_v47, %v3472_v35 }
 0x179   : > { %v1758_v49 = vpop.f32.mrf.mxu0 }
 0x17a   : > { %v1871_v61 = vpop.f32.mrf.mxu1  ;;  %1948 = vst [vmem:[%s3342_s25 + $0x90] sm:$0xff] %v1916_v14  ;;  %v1917_v16 = vmax.f32 %v1866_v39, 0.0  ;;  %v1870_v62 = vadd.f32 %v1869_v38, %v1757_v40  ;;  %v1759_v50 = vadd.f32 %v1758_v49, %v1646_v13  ;;  %v3474_v38 = vld [vmem:[#allocation12_spill] sm:$0xff]  ;;  %v3475_v13 = vld [vmem:[#allocation13_spill] sm:$0xff] }
 0x17b   : > { %v1760_v37 = vpop.f32.mrf.mxu0  ;;  %v1668_v14 = vadd.f32 %v3475_v13, %v3474_v38 }
 0x17c   : > { %v1873_v41 = vpop.f32.mrf.mxu1  ;;  %1949 = vst [vmem:[%s3342_s25 + $0x98] sm:$0xff] %v1917_v16  ;;  %v1918_v18 = vmax.f32 %v1870_v62, 0.0  ;;  %v1872_v42 = vadd.f32 %v1871_v61, %v1759_v50  ;;  %v1761_v63 = vadd.f32 %v1760_v37, %v1648_v15  ;;  %v3476_v16 = vld [vmem:[#allocation14_spill] sm:$0xff]  ;;  %v3477_v62 = vld [vmem:[#allocation15_spill] sm:$0xff] }
 0x17d   : > { %v1762_v0 = vpop.f32.mrf.mxu0  ;;  %v1670_v50 = vadd.f32 %v3477_v62, %v3476_v16 }
 0x17e   : > { %v1875_v30 = vpop.f32.mrf.mxu1  ;;  %1950 = vst [vmem:[%s3342_s25 + $0xa0] sm:$0xff] %v1918_v18  ;;  %v1919_v20 = vmax.f32 %v1872_v42, 0.0  ;;  %v1874_v51 = vadd.f32 %v1873_v41, %v1761_v63  ;;  %v1763_v52 = vadd.f32 %v1762_v0, %v1650_v17 }
 0x17f   : > { %v1766_v31 = vpop.f32.mrf.mxu0 }
 0x180   : > { %v1879_v1 = vpop.f32.mrf.mxu1  ;;  %1951 = vst [vmem:[%s3342_s25 + $0xa8] sm:$0xff] %v1919_v20  ;;  %v1920_v22 = vmax.f32 %v1874_v51, 0.0  ;;  %v1876_v26 = vadd.f32 %v1875_v30, %v1763_v52  ;;  %v1767_v43 = vadd.f32 %v1766_v31, %v1654_v19 }
 0x181   : > { %v1768_v44 = vpop.f32.mrf.mxu0 }
 0x182   : > { %v1881_v53 = vpop.f32.mrf.mxu1  ;;  %1952 = vst [vmem:[%s3342_s25 + $0xb0] sm:$0xff] %v1920_v22  ;;  %v1921_v24 = vmax.f32 %v1876_v26, 0.0  ;;  %v1880_v54 = vadd.f32 %v1879_v1, %v1767_v43  ;;  %v1769_v29 = vadd.f32 %v1768_v44, %v1656_v21 }
 0x183   : > { %v1770_v32 = vpop.f32.mrf.mxu0 }
 0x184   : > { %v1883_v33 = vpop.f32.mrf.mxu1  ;;  %1953 = vst [vmem:[%s3342_s25 + $0xb8] sm:$0xff] %v1921_v24  ;;  %v1922_v34 = vmax.f32 %v1880_v54, 0.0  ;;  %v1882_v55 = vadd.f32 %v1881_v53, %v1769_v29  ;;  %v1771_v56 = vadd.f32 %v1770_v32, %v1658_v23 }
 0x185   : > { %v1772_v45 = vpop.f32.mrf.mxu0 }
 0x186   : > { %v1885_v7 = vpop.f32.mrf.mxu1  ;;  %1954 = vst [vmem:[%s3342_s25 + $0xc0] sm:$0xff] %v1922_v34  ;;  %v1923_v28 = vmax.f32 %v1882_v55, 0.0  ;;  %v1884_v57 = vadd.f32 %v1883_v33, %v1771_v56  ;;  %v1773_v9 = vadd.f32 %v1772_v45, %v1660_v25 }
 0x187   : > { %v1776_v10 = vpop.f32.mrf.mxu0 }
 0x188   : > { %v1889_v58 = vpop.f32.mrf.mxu1  ;;  %1955 = vst [vmem:[%s3342_s25 + $0xc8] sm:$0xff] %v1923_v28  ;;  %v1924_v11 = vmax.f32 %v1884_v57, 0.0  ;;  %v1886_v12 = vadd.f32 %v1885_v7, %v1773_v9  ;;  %v1777_v36 = vadd.f32 %v1776_v10, %v1664_v27 }
 0x189   : > { %v1778_v59 = vpop.f32.mrf.mxu0 }
 0x18a   : > { %v1891_v60 = vpop.f32.mrf.mxu1  ;;  %1956 = vst [vmem:[%s3342_s25 + $0xd0] sm:$0xff] %v1924_v11  ;;  %v1925_v39 = vmax.f32 %v1886_v12, 0.0  ;;  %v1890_v40 = vadd.f32 %v1889_v58, %v1777_v36  ;;  %v1779_v49 = vadd.f32 %v1778_v59, %v1666_v48 }
 0x18b   : > { %v1780_v61 = vpop.f32.mrf.mxu0 }
 0x18c   : > { %v1893_v15 = vpop.f32.mrf.mxu1  ;;  %1957 = vst [vmem:[%s3342_s25 + $0xd8] sm:$0xff] %v1925_v39  ;;  %v1926_v37 = vmax.f32 %v1890_v40, 0.0  ;;  %v1892_v41 = vadd.f32 %v1891_v60, %v1779_v49  ;;  %v1781_v17 = vadd.f32 %v1780_v61, %v1668_v14 }
 0x18d   : > { %v1782_v18 = vpop.f32.mrf.mxu0 }
 0x18e   : > { %1958 = vst [vmem:[%s3342_s25 + $0xe0] sm:$0xff] %v1926_v37  ;;  %v1927_v42 = vmax.f32 %v1892_v41, 0.0  ;;  %v1894_v63 = vadd.f32 %v1893_v15, %v1781_v17  ;;  %v1783_v0 = vadd.f32 %v1782_v18, %v1670_v50  ;;  %v1895_v30 = vpop.f32.mrf.mxu1 }
 0x190   : > { %1959 = vst [vmem:[%s3342_s25 + $0xe8] sm:$0xff] %v1927_v42  ;;  %v1928_v19 = vmax.f32 %v1894_v63, 0.0  ;;  %v1896_v20 = vadd.f32 %v1895_v30, %v1783_v0 }
 0x192   : > { %1960 = vst [vmem:[%s3342_s25 + $0xf0] sm:$0xff] %v1928_v19  ;;  %v1929_v51 = vmax.f32 %v1896_v20, 0.0 }
 0x194   : > { %1961 = vst [vmem:[%s3342_s25 + $0xf8] sm:$0xff] %v1929_v51 }
 0x195 PF: > { %s12_s13 = sadd.s32 1, %s2687_s13   ;;  %s3478_s9 = smov %s2679_s11 }
 0x196   : > { %p9_p7 = scmp.ge.s32.totalorder %s12_s13, 6   ;;  %s3479_s10 = smov %s2683_s12 }
 0x197   : > { %s3480_s11 = smov %s3483_s14  ;;  %s3481_s12 = smov %s3487_s15 }
 0x198   :  { %11 = sbr.rel (!%p9_p7) target bundleno = 3 (0x3), region = 65 }

</bundles_post_ra>
